<compile_context>
chip_gen: v7x
topology: tpu7x:2x2x1
jax: 0.10.0
libtpu: 0.0.40
codegen_flags: <defaults>
</compile_context>

<pallas_src>
import functools
import math

import jax
import jax.numpy as jnp
from jax.experimental import pallas as pl
from jax.experimental.pallas import tpu as pltpu

HIDDEN = 32
HEADS = 4
HEAD_DIM = HIDDEN // HEADS


def _pick_batch_block(batch, seq, hidden):
    """Batch rows per grid step.

    Only split the batch across grid steps (and hence across the two v7x TensorCores)
    when a step still carries enough work to hide the ~0.35us fixed per-step overhead and
    the re-fetched constant-index weight blocks; otherwise run everything in one step.
    """
    per_row_bytes = 4 * seq * (4 * hidden + seq)   # q/k/v/out rows + one score tile, f32
    if batch * per_row_bytes < (1 << 20):          # < ~1 MiB of work: single grid step
        return batch
    for cand in (8, 4, 2):
        if batch % cand == 0 and batch // cand >= 2:
            return cand
    return batch


def mha_kernel(qkv_ref, mask_ref, wqkv_ref, bqkv_ref, wo_ref, bo_ref, out_ref,
               *, heads, matmul_dtype):
    # Per-grid-step views:
    #   qkv_ref : (3, Bb, S, H)      mask_ref : (Bb, S, S) float (0 = masked out)
    #   wqkv_ref: (3, heads, H, D)   bqkv_ref : (3, heads, 1, D)  (scale folded into [0])
    #   wo_ref  : (heads, D, H)      bo_ref   : (1, H)
    #   out_ref : (Bb, S, H)
    f32 = jnp.float32
    mm = matmul_dtype
    _, bb, s, hidden = qkv_ref.shape
    d = hidden // heads
    n = bb * s

    # Flattened-token activations (layout-preserving leading-dim reshapes only).
    xq = qkv_ref[0].reshape(n, hidden).astype(mm)
    xk = qkv_ref[1].reshape(n, hidden).astype(mm)
    xv = qkv_ref[2].reshape(n, hidden).astype(mm)

    wqkv = wqkv_ref[...]           # (3, heads, H, D)
    bqkv = bqkv_ref[...]           # (3, heads, 1, D)
    wo = wo_ref[...]               # (heads, D, H)

    # masked_fill(mask == 0, -10000): hoist the compare once, reuse it for every head.
    is_masked = mask_ref[...] == 0.0                              # (Bb, S, S)

    # Output accumulator; head merge is fused into the output projection.
    acc = jnp.broadcast_to(bo_ref[...].astype(f32), (n, hidden))  # (N, H)

    for h in range(heads):                                        # static unroll, heads=4
        # Weight-stationary per-head projections: (N, H) @ (H, D); bias add in f32.
        qh = (jnp.dot(xq, wqkv[0, h].astype(mm), preferred_element_type=f32)
              + bqkv[0, h]).reshape(bb, s, d)
        kh = (jnp.dot(xk, wqkv[1, h].astype(mm), preferred_element_type=f32)
              + bqkv[1, h]).reshape(bb, s, d)
        vh = (jnp.dot(xv, wqkv[2, h].astype(mm), preferred_element_type=f32)
              + bqkv[2, h]).reshape(bb, s, d)

        # Scores (1/sqrt(D) already folded into Wq/bq), batched over batch rows only.
        scores = jnp.einsum('bqd,bkd->bqk', qh.astype(mm), kh.astype(mm),
                            preferred_element_type=f32)           # (Bb, S, S)
        scores = jnp.where(is_masked, -10000.0, scores)

        # Numerically-stable softmax in f32; exp + reciprocal run on the EUP.
        scores = scores - jnp.max(scores, axis=-1, keepdims=True)
        p = jnp.exp(scores)
        p = p * pl.reciprocal(jnp.sum(p, axis=-1, keepdims=True), approx=True)

        ctx = jnp.einsum('bqk,bkd->bqd', p.astype(mm), vh.astype(mm),
                         preferred_element_type=f32)              # (Bb, S, D)

        # out[n, :] += ctx_h[n, :] @ Wo^T[h*D:(h+1)*D, :]  (head merge fused into the
        # output projection: no Wo replication, no oversized f32 partial tensor).
        acc = acc + jnp.dot(ctx.reshape(n, d).astype(mm), wo[h].astype(mm),
                            preferred_element_type=f32)

    # TODO(synk): at store-bound production shapes, pack the result lane-dense (last dim a
    # multiple of 128) before the store to avoid masked vst; skipped at these tiny dims.
    out_ref[...] = acc.reshape(bb, s, hidden).astype(out_ref.dtype)


def multi_head_attention(q, k, v, mask, params, *, head_num=HEADS,
                         matmul_dtype=jnp.float32):
    B, S, H = q.shape
    D = H // head_num
    wq, bq, wk, bk, wv, bv, wo, bo = params
    scale = 1.0 / math.sqrt(D)

    # nn.Linear keeps W as [out, in]; x @ W.T uses column block h*D:(h+1)*D for head h.
    # Pre-split the weights per head wrapper-side so the kernel never lane-slices or
    # transposes, and fold the 1/sqrt(D) score scale into Wq / bq.
    def per_head(w, s_=1.0):
        return (w.T * s_).reshape(H, head_num, D).transpose(1, 0, 2)      # (heads, H, D)

    wqkv = jnp.stack([per_head(wq, scale), per_head(wk), per_head(wv)])   # (3, heads, H, D)
    bqkv = jnp.stack([(bq * scale).reshape(head_num, 1, D),
                      bk.reshape(head_num, 1, D),
                      bv.reshape(head_num, 1, D)])                        # (3, heads, 1, D)
    wo_hdo = wo.T.reshape(head_num, D, H)                                 # (heads, D, H)
    bo2 = bo.reshape(1, H)

    qkv = jnp.stack([q, k, v])                                            # (3, B, S, H)
    mask_f = mask.astype(jnp.float32)

    bb = _pick_batch_block(B, S, H)
    grid = (B // bb,)

    qkv_spec = pl.BlockSpec((3, bb, S, H), lambda i: (0, i, 0, 0))
    mask_spec = pl.BlockSpec((bb, S, S), lambda i: (i, 0, 0))
    wqkv_spec = pl.BlockSpec(wqkv.shape, lambda i: (0, 0, 0, 0))
    bqkv_spec = pl.BlockSpec(bqkv.shape, lambda i: (0, 0, 0, 0))
    wo_spec = pl.BlockSpec(wo_hdo.shape, lambda i: (0, 0, 0))
    bo_spec = pl.BlockSpec(bo2.shape, lambda i: (0, 0))
    out_spec = pl.BlockSpec((bb, S, H), lambda i: (i, 0, 0))

    kernel = functools.partial(mha_kernel, heads=head_num, matmul_dtype=matmul_dtype)

    return pl.pallas_call(
        kernel,
        out_shape=jax.ShapeDtypeStruct((B, S, H), q.dtype),
        grid_spec=pltpu.PrefetchScalarGridSpec(
            num_scalar_prefetch=0,
            grid=grid,
            in_specs=[qkv_spec, mask_spec, wqkv_spec, bqkv_spec, wo_spec, bo_spec],
            out_specs=out_spec,
        ),
        compiler_params=pltpu.CompilerParams(
            dimension_semantics=("parallel",)),
    )(qkv, mask_f, wqkv, bqkv, wo_hdo, bo2)


def reference_mha(q, k, v, mask, params):
    """Pure-JAX reference of the PyTorch forward pass."""
    wq, bq, wk, bk, wv, bv, wo, bo = params
    B, S, H = q.shape
    D = H // HEADS

    def split_heads(t):
        return t.reshape(B, S, HEADS, D).transpose(0, 2, 1, 3)

    qp = split_heads(q @ wq.T + bq)
    kp = split_heads(k @ wk.T + bk)
    vp = split_heads(v @ wv.T + bv)
    score = jnp.einsum("bhqd,bhkd->bhqk", qp, kp) / math.sqrt(D)
    score = jnp.where(mask[:, None, :, :] == 0, -10000.0, score)
    score = jax.nn.softmax(score, axis=-1)
    out = jnp.einsum("bhqk,bhkd->bhqd", score, vp)
    out = out.transpose(0, 2, 1, 3).reshape(B, S, H)
    return out @ wo.T + bo


def init_params(key, hidden):
    bound = 1.0 / math.sqrt(hidden)
    keys = jax.random.split(key, 8)
    shapes = [(hidden, hidden), (hidden,)] * 4
    return tuple(
        jax.random.uniform(k, s, jnp.float32, -bound, bound)
        for k, s in zip(keys, shapes)
    )


if __name__ == "__main__":
    B, S, H = 4, 8, HIDDEN   # tiny -> whole problem runs in a single grid step

    key = jax.random.PRNGKey(0)
    kq, kk, kv, kp = jax.random.split(key, 4)
    q = jax.random.normal(kq, (B, S, H), jnp.float32)
    k = jax.random.normal(kk, (B, S, H), jnp.float32)
    v = jax.random.normal(kv, (B, S, H), jnp.float32)
    # Causal mask [B, S, S]: 1 = keep, 0 = masked (filled with -10000 before softmax)
    mask = jnp.broadcast_to(jnp.tril(jnp.ones((S, S), jnp.float32)), (B, S, S))

    params = init_params(kp, H)

    out = multi_head_attention(q, k, v, mask, params)
    out = jax.block_until_ready(out)

    ref = reference_mha(q, k, v, mask, params)
    assert out.shape == (B, S, H)
    # 2e-3 tolerance: the only approximate step vs. the f32 reference is the EUP
    # approximate reciprocal in the softmax normalization (everything else is f32).
    assert jnp.allclose(out, ref, atol=2e-3, rtol=2e-3), float(jnp.max(jnp.abs(out - ref)))

    print("KERNEL_OK")
</pallas_src>

<mosaic_0001>
module attributes {stable_mosaic.version = 11 : i64} {
  func.func @mha_kernel(%arg0: i32, %arg1: memref<3x4x8x32xf32, #tpu.memory_space<vmem>>, %arg2: memref<4x8x8xf32, #tpu.memory_space<vmem>>, %arg3: memref<3x4x32x8xf32, #tpu.memory_space<vmem>>, %arg4: memref<3x4x1x8xf32, #tpu.memory_space<vmem>>, %arg5: memref<4x8x32xf32, #tpu.memory_space<vmem>>, %arg6: memref<1x32xf32, #tpu.memory_space<vmem>>, %arg7: memref<4x8x32xf32, #tpu.memory_space<vmem>>) attributes {dimension_semantics = [#tpu.dimension_semantics<parallel>], iteration_bounds = array<i64: 1>, scalar_prefetch = 0 : i64, scratch_operands = 0 : i64, tpu.core_type = #tpu.core_type<tc>, window_params = [{transform_indices = @transform_0, window_bounds = array<i64: 3, 4, 8, 32>}, {transform_indices = @transform_1, window_bounds = array<i64: 4, 8, 8>}, {pipeline_mode = #tpu.pipeline_mode<synchronous>, transform_indices = @transform_2, window_bounds = array<i64: 3, 4, 32, 8>}, {pipeline_mode = #tpu.pipeline_mode<synchronous>, transform_indices = @transform_3, window_bounds = array<i64: 3, 4, 1, 8>}, {pipeline_mode = #tpu.pipeline_mode<synchronous>, transform_indices = @transform_4, window_bounds = array<i64: 4, 8, 32>}, {pipeline_mode = #tpu.pipeline_mode<synchronous>, transform_indices = @transform_5, window_bounds = array<i64: 1, 32>}, {transform_indices = @transform_6, window_bounds = array<i64: 4, 8, 32>}]} {
    %c0 = arith.constant 0 : index
    %c0_0 = arith.constant 0 : index
    %c0_1 = arith.constant 0 : index
    %c0_2 = arith.constant 0 : index
    %0 = vector.load %arg1[%c0, %c0_0, %c0_1, %c0_2] : memref<3x4x8x32xf32, #tpu.memory_space<vmem>>, vector<1x4x8x32xf32>
    %1 = vector.shape_cast %0 : vector<1x4x8x32xf32> to vector<4x8x32xf32>
    %2 = vector.shape_cast %1 : vector<4x8x32xf32> to vector<32x32xf32>
    %c1 = arith.constant 1 : index
    %c0_3 = arith.constant 0 : index
    %c0_4 = arith.constant 0 : index
    %c0_5 = arith.constant 0 : index
    %3 = vector.load %arg1[%c1, %c0_3, %c0_4, %c0_5] : memref<3x4x8x32xf32, #tpu.memory_space<vmem>>, vector<1x4x8x32xf32>
    %4 = vector.shape_cast %3 : vector<1x4x8x32xf32> to vector<4x8x32xf32>
    %5 = vector.shape_cast %4 : vector<4x8x32xf32> to vector<32x32xf32>
    %c2 = arith.constant 2 : index
    %c0_6 = arith.constant 0 : index
    %c0_7 = arith.constant 0 : index
    %c0_8 = arith.constant 0 : index
    %6 = vector.load %arg1[%c2, %c0_6, %c0_7, %c0_8] : memref<3x4x8x32xf32, #tpu.memory_space<vmem>>, vector<1x4x8x32xf32>
    %7 = vector.shape_cast %6 : vector<1x4x8x32xf32> to vector<4x8x32xf32>
    %8 = vector.shape_cast %7 : vector<4x8x32xf32> to vector<32x32xf32>
    %c0_9 = arith.constant 0 : index
    %c0_10 = arith.constant 0 : index
    %c0_11 = arith.constant 0 : index
    %c0_12 = arith.constant 0 : index
    %9 = vector.load %arg3[%c0_9, %c0_10, %c0_11, %c0_12] : memref<3x4x32x8xf32, #tpu.memory_space<vmem>>, vector<3x4x32x8xf32>
    %c0_13 = arith.constant 0 : index
    %c0_14 = arith.constant 0 : index
    %c0_15 = arith.constant 0 : index
    %c0_16 = arith.constant 0 : index
    %10 = vector.load %arg4[%c0_13, %c0_14, %c0_15, %c0_16] : memref<3x4x1x8xf32, #tpu.memory_space<vmem>>, vector<3x4x1x8xf32>
    %c0_17 = arith.constant 0 : index
    %c0_18 = arith.constant 0 : index
    %c0_19 = arith.constant 0 : index
    %11 = vector.load %arg5[%c0_17, %c0_18, %c0_19] : memref<4x8x32xf32, #tpu.memory_space<vmem>>, vector<4x8x32xf32>
    %c0_20 = arith.constant 0 : index
    %c0_21 = arith.constant 0 : index
    %c0_22 = arith.constant 0 : index
    %12 = vector.load %arg2[%c0_20, %c0_21, %c0_22] : memref<4x8x8xf32, #tpu.memory_space<vmem>>, vector<4x8x8xf32>
    %cst = arith.constant 0.000000e+00 : f32
    %13 = vector.broadcast %cst : f32 to vector<4x8x8xf32>
    %14 = arith.cmpf oeq, %12, %13 : vector<4x8x8xf32>
    %c0_23 = arith.constant 0 : index
    %c0_24 = arith.constant 0 : index
    %15 = vector.load %arg6[%c0_23, %c0_24] : memref<1x32xf32, #tpu.memory_space<vmem>>, vector<1x32xf32>
    %16 = vector.shape_cast %15 : vector<1x32xf32> to vector<1x32xf32>
    %17 = vector.broadcast %16 : vector<1x32xf32> to vector<32x32xf32>
    %18 = vector.extract_strided_slice %9 {offsets = [0, 0, 0, 0], sizes = [1, 1, 32, 8], strides = [1, 1, 1, 1]} : vector<3x4x32x8xf32> to vector<1x1x32x8xf32>
    %19 = vector.shape_cast %18 : vector<1x1x32x8xf32> to vector<32x8xf32>
    %cst_25 = arith.constant dense<0.000000e+00> : vector<32x8xf32>
    %20 = tpu.matmul %2, %19, %cst_25 {dimension_numbers = #tpu.dot_dimension_numbers<[1], [0], [0], [1], [0, 0, 1, 1], [], []>} : vector<32x32xf32>, vector<32x8xf32>, vector<32x8xf32> -> vector<32x8xf32>
    %21 = vector.extract_strided_slice %10 {offsets = [0, 0, 0, 0], sizes = [1, 1, 1, 8], strides = [1, 1, 1, 1]} : vector<3x4x1x8xf32> to vector<1x1x1x8xf32>
    %22 = vector.shape_cast %21 : vector<1x1x1x8xf32> to vector<1x8xf32>
    %23 = vector.broadcast %22 : vector<1x8xf32> to vector<32x8xf32>
    %24 = arith.addf %20, %23 : vector<32x8xf32>
    %25 = vector.shape_cast %24 : vector<32x8xf32> to vector<4x8x8xf32>
    %26 = vector.extract_strided_slice %9 {offsets = [1, 0, 0, 0], sizes = [1, 1, 32, 8], strides = [1, 1, 1, 1]} : vector<3x4x32x8xf32> to vector<1x1x32x8xf32>
    %27 = vector.shape_cast %26 : vector<1x1x32x8xf32> to vector<32x8xf32>
    %cst_26 = arith.constant dense<0.000000e+00> : vector<32x8xf32>
    %28 = tpu.matmul %5, %27, %cst_26 {dimension_numbers = #tpu.dot_dimension_numbers<[1], [0], [0], [1], [0, 0, 1, 1], [], []>} : vector<32x32xf32>, vector<32x8xf32>, vector<32x8xf32> -> vector<32x8xf32>
    %29 = vector.extract_strided_slice %10 {offsets = [1, 0, 0, 0], sizes = [1, 1, 1, 8], strides = [1, 1, 1, 1]} : vector<3x4x1x8xf32> to vector<1x1x1x8xf32>
    %30 = vector.shape_cast %29 : vector<1x1x1x8xf32> to vector<1x8xf32>
    %31 = vector.broadcast %30 : vector<1x8xf32> to vector<32x8xf32>
    %32 = arith.addf %28, %31 : vector<32x8xf32>
    %33 = vector.shape_cast %32 : vector<32x8xf32> to vector<4x8x8xf32>
    %34 = vector.extract_strided_slice %9 {offsets = [2, 0, 0, 0], sizes = [1, 1, 32, 8], strides = [1, 1, 1, 1]} : vector<3x4x32x8xf32> to vector<1x1x32x8xf32>
    %35 = vector.shape_cast %34 : vector<1x1x32x8xf32> to vector<32x8xf32>
    %cst_27 = arith.constant dense<0.000000e+00> : vector<32x8xf32>
    %36 = tpu.matmul %8, %35, %cst_27 {dimension_numbers = #tpu.dot_dimension_numbers<[1], [0], [0], [1], [0, 0, 1, 1], [], []>} : vector<32x32xf32>, vector<32x8xf32>, vector<32x8xf32> -> vector<32x8xf32>
    %37 = vector.extract_strided_slice %10 {offsets = [2, 0, 0, 0], sizes = [1, 1, 1, 8], strides = [1, 1, 1, 1]} : vector<3x4x1x8xf32> to vector<1x1x1x8xf32>
    %38 = vector.shape_cast %37 : vector<1x1x1x8xf32> to vector<1x8xf32>
    %39 = vector.broadcast %38 : vector<1x8xf32> to vector<32x8xf32>
    %40 = arith.addf %36, %39 : vector<32x8xf32>
    %41 = vector.shape_cast %40 : vector<32x8xf32> to vector<4x8x8xf32>
    "tpu.trace_start"() <{level = 10 : i32, message = "bqd,bkd->bqk"}> : () -> ()
    %cst_28 = arith.constant dense<0.000000e+00> : vector<4x8x8xf32>
    %42 = tpu.matmul %25, %33, %cst_28 {dimension_numbers = #tpu.dot_dimension_numbers<[2], [2], [1], [1], [0, 0, 0, 1, 1, 1], [0], [0]>} : vector<4x8x8xf32>, vector<4x8x8xf32>, vector<4x8x8xf32> -> vector<4x8x8xf32>
    %cst_29 = arith.constant -1.000000e+04 : f32
    "tpu.trace_stop"() : () -> ()
    %43 = vector.broadcast %cst_29 : f32 to vector<4x8x8xf32>
    %44 = arith.select %14, %43, %42 : vector<4x8x8xi1>, vector<4x8x8xf32>
    %cst_30 = arith.constant dense<0xFF800000> : vector<4x8xf32>
    %45 = vector.multi_reduction <maximumf>, %44, %cst_30 [2] : vector<4x8x8xf32> to vector<4x8xf32>
    %46 = vector.shape_cast %45 : vector<4x8xf32> to vector<4x8x1xf32>
    %47 = vector.broadcast %46 : vector<4x8x1xf32> to vector<4x8x8xf32>
    %48 = arith.subf %44, %47 : vector<4x8x8xf32>
    %49 = math.exp %48 : vector<4x8x8xf32>
    %cst_31 = arith.constant dense<0.000000e+00> : vector<4x8xf32>
    %50 = vector.multi_reduction <add>, %49, %cst_31 [2] : vector<4x8x8xf32> to vector<4x8xf32>
    %51 = vector.shape_cast %50 : vector<4x8xf32> to vector<4x8x1xf32>
    %52 = tpu.reciprocal %51 {approx = true} : vector<4x8x1xf32> -> vector<4x8x1xf32>
    %53 = vector.broadcast %52 : vector<4x8x1xf32> to vector<4x8x8xf32>
    %54 = arith.mulf %49, %53 : vector<4x8x8xf32>
    "tpu.trace_start"() <{level = 10 : i32, message = "bqk,bkd->bqd"}> : () -> ()
    %cst_32 = arith.constant dense<0.000000e+00> : vector<4x8x8xf32>
    %55 = tpu.matmul %54, %41, %cst_32 {dimension_numbers = #tpu.dot_dimension_numbers<[2], [1], [1], [2], [0, 0, 0, 1, 1, 2], [0], [0]>} : vector<4x8x8xf32>, vector<4x8x8xf32>, vector<4x8x8xf32> -> vector<4x8x8xf32>
    "tpu.trace_stop"() : () -> ()
    %56 = vector.shape_cast %55 : vector<4x8x8xf32> to vector<32x8xf32>
    %57 = vector.extract_strided_slice %11 {offsets = [0, 0, 0], sizes = [1, 8, 32], strides = [1, 1, 1]} : vector<4x8x32xf32> to vector<1x8x32xf32>
    %58 = vector.shape_cast %57 : vector<1x8x32xf32> to vector<8x32xf32>
    %cst_33 = arith.constant dense<0.000000e+00> : vector<32x32xf32>
    %59 = tpu.matmul %56, %58, %cst_33 {dimension_numbers = #tpu.dot_dimension_numbers<[1], [0], [0], [1], [0, 0, 1, 1], [], []>} : vector<32x8xf32>, vector<8x32xf32>, vector<32x32xf32> -> vector<32x32xf32>
    %60 = arith.addf %17, %59 : vector<32x32xf32>
    %61 = vector.extract_strided_slice %9 {offsets = [0, 1, 0, 0], sizes = [1, 1, 32, 8], strides = [1, 1, 1, 1]} : vector<3x4x32x8xf32> to vector<1x1x32x8xf32>
    %62 = vector.shape_cast %61 : vector<1x1x32x8xf32> to vector<32x8xf32>
    %cst_34 = arith.constant dense<0.000000e+00> : vector<32x8xf32>
    %63 = tpu.matmul %2, %62, %cst_34 {dimension_numbers = #tpu.dot_dimension_numbers<[1], [0], [0], [1], [0, 0, 1, 1], [], []>} : vector<32x32xf32>, vector<32x8xf32>, vector<32x8xf32> -> vector<32x8xf32>
    %64 = vector.extract_strided_slice %10 {offsets = [0, 1, 0, 0], sizes = [1, 1, 1, 8], strides = [1, 1, 1, 1]} : vector<3x4x1x8xf32> to vector<1x1x1x8xf32>
    %65 = vector.shape_cast %64 : vector<1x1x1x8xf32> to vector<1x8xf32>
    %66 = vector.broadcast %65 : vector<1x8xf32> to vector<32x8xf32>
    %67 = arith.addf %63, %66 : vector<32x8xf32>
    %68 = vector.shape_cast %67 : vector<32x8xf32> to vector<4x8x8xf32>
    %69 = vector.extract_strided_slice %9 {offsets = [1, 1, 0, 0], sizes = [1, 1, 32, 8], strides = [1, 1, 1, 1]} : vector<3x4x32x8xf32> to vector<1x1x32x8xf32>
    %70 = vector.shape_cast %69 : vector<1x1x32x8xf32> to vector<32x8xf32>
    %cst_35 = arith.constant dense<0.000000e+00> : vector<32x8xf32>
    %71 = tpu.matmul %5, %70, %cst_35 {dimension_numbers = #tpu.dot_dimension_numbers<[1], [0], [0], [1], [0, 0, 1, 1], [], []>} : vector<32x32xf32>, vector<32x8xf32>, vector<32x8xf32> -> vector<32x8xf32>
    %72 = vector.extract_strided_slice %10 {offsets = [1, 1, 0, 0], sizes = [1, 1, 1, 8], strides = [1, 1, 1, 1]} : vector<3x4x1x8xf32> to vector<1x1x1x8xf32>
    %73 = vector.shape_cast %72 : vector<1x1x1x8xf32> to vector<1x8xf32>
    %74 = vector.broadcast %73 : vector<1x8xf32> to vector<32x8xf32>
    %75 = arith.addf %71, %74 : vector<32x8xf32>
    %76 = vector.shape_cast %75 : vector<32x8xf32> to vector<4x8x8xf32>
    %77 = vector.extract_strided_slice %9 {offsets = [2, 1, 0, 0], sizes = [1, 1, 32, 8], strides = [1, 1, 1, 1]} : vector<3x4x32x8xf32> to vector<1x1x32x8xf32>
    %78 = vector.shape_cast %77 : vector<1x1x32x8xf32> to vector<32x8xf32>
    %cst_36 = arith.constant dense<0.000000e+00> : vector<32x8xf32>
    %79 = tpu.matmul %8, %78, %cst_36 {dimension_numbers = #tpu.dot_dimension_numbers<[1], [0], [0], [1], [0, 0, 1, 1], [], []>} : vector<32x32xf32>, vector<32x8xf32>, vector<32x8xf32> -> vector<32x8xf32>
    %80 = vector.extract_strided_slice %10 {offsets = [2, 1, 0, 0], sizes = [1, 1, 1, 8], strides = [1, 1, 1, 1]} : vector<3x4x1x8xf32> to vector<1x1x1x8xf32>
    %81 = vector.shape_cast %80 : vector<1x1x1x8xf32> to vector<1x8xf32>
    %82 = vector.broadcast %81 : vector<1x8xf32> to vector<32x8xf32>
    %83 = arith.addf %79, %82 : vector<32x8xf32>
    %84 = vector.shape_cast %83 : vector<32x8xf32> to vector<4x8x8xf32>
    "tpu.trace_start"() <{level = 10 : i32, message = "bqd,bkd->bqk"}> : () -> ()
    %cst_37 = arith.constant dense<0.000000e+00> : vector<4x8x8xf32>
    %85 = tpu.matmul %68, %76, %cst_37 {dimension_numbers = #tpu.dot_dimension_numbers<[2], [2], [1], [1], [0, 0, 0, 1, 1, 1], [0], [0]>} : vector<4x8x8xf32>, vector<4x8x8xf32>, vector<4x8x8xf32> -> vector<4x8x8xf32>
    %cst_38 = arith.constant -1.000000e+04 : f32
    "tpu.trace_stop"() : () -> ()
    %86 = vector.broadcast %cst_38 : f32 to vector<4x8x8xf32>
    %87 = arith.select %14, %86, %85 : vector<4x8x8xi1>, vector<4x8x8xf32>
    %cst_39 = arith.constant dense<0xFF800000> : vector<4x8xf32>
    %88 = vector.multi_reduction <maximumf>, %87, %cst_39 [2] : vector<4x8x8xf32> to vector<4x8xf32>
    %89 = vector.shape_cast %88 : vector<4x8xf32> to vector<4x8x1xf32>
    %90 = vector.broadcast %89 : vector<4x8x1xf32> to vector<4x8x8xf32>
    %91 = arith.subf %87, %90 : vector<4x8x8xf32>
    %92 = math.exp %91 : vector<4x8x8xf32>
    %cst_40 = arith.constant dense<0.000000e+00> : vector<4x8xf32>
    %93 = vector.multi_reduction <add>, %92, %cst_40 [2] : vector<4x8x8xf32> to vector<4x8xf32>
    %94 = vector.shape_cast %93 : vector<4x8xf32> to vector<4x8x1xf32>
    %95 = tpu.reciprocal %94 {approx = true} : vector<4x8x1xf32> -> vector<4x8x1xf32>
    %96 = vector.broadcast %95 : vector<4x8x1xf32> to vector<4x8x8xf32>
    %97 = arith.mulf %92, %96 : vector<4x8x8xf32>
    "tpu.trace_start"() <{level = 10 : i32, message = "bqk,bkd->bqd"}> : () -> ()
    %cst_41 = arith.constant dense<0.000000e+00> : vector<4x8x8xf32>
    %98 = tpu.matmul %97, %84, %cst_41 {dimension_numbers = #tpu.dot_dimension_numbers<[2], [1], [1], [2], [0, 0, 0, 1, 1, 2], [0], [0]>} : vector<4x8x8xf32>, vector<4x8x8xf32>, vector<4x8x8xf32> -> vector<4x8x8xf32>
    "tpu.trace_stop"() : () -> ()
    %99 = vector.shape_cast %98 : vector<4x8x8xf32> to vector<32x8xf32>
    %100 = vector.extract_strided_slice %11 {offsets = [1, 0, 0], sizes = [1, 8, 32], strides = [1, 1, 1]} : vector<4x8x32xf32> to vector<1x8x32xf32>
    %101 = vector.shape_cast %100 : vector<1x8x32xf32> to vector<8x32xf32>
    %cst_42 = arith.constant dense<0.000000e+00> : vector<32x32xf32>
    %102 = tpu.matmul %99, %101, %cst_42 {dimension_numbers = #tpu.dot_dimension_numbers<[1], [0], [0], [1], [0, 0, 1, 1], [], []>} : vector<32x8xf32>, vector<8x32xf32>, vector<32x32xf32> -> vector<32x32xf32>
    %103 = arith.addf %60, %102 : vector<32x32xf32>
    %104 = vector.extract_strided_slice %9 {offsets = [0, 2, 0, 0], sizes = [1, 1, 32, 8], strides = [1, 1, 1, 1]} : vector<3x4x32x8xf32> to vector<1x1x32x8xf32>
    %105 = vector.shape_cast %104 : vector<1x1x32x8xf32> to vector<32x8xf32>
    %cst_43 = arith.constant dense<0.000000e+00> : vector<32x8xf32>
    %106 = tpu.matmul %2, %105, %cst_43 {dimension_numbers = #tpu.dot_dimension_numbers<[1], [0], [0], [1], [0, 0, 1, 1], [], []>} : vector<32x32xf32>, vector<32x8xf32>, vector<32x8xf32> -> vector<32x8xf32>
    %107 = vector.extract_strided_slice %10 {offsets = [0, 2, 0, 0], sizes = [1, 1, 1, 8], strides = [1, 1, 1, 1]} : vector<3x4x1x8xf32> to vector<1x1x1x8xf32>
    %108 = vector.shape_cast %107 : vector<1x1x1x8xf32> to vector<1x8xf32>
    %109 = vector.broadcast %108 : vector<1x8xf32> to vector<32x8xf32>
    %110 = arith.addf %106, %109 : vector<32x8xf32>
    %111 = vector.shape_cast %110 : vector<32x8xf32> to vector<4x8x8xf32>
    %112 = vector.extract_strided_slice %9 {offsets = [1, 2, 0, 0], sizes = [1, 1, 32, 8], strides = [1, 1, 1, 1]} : vector<3x4x32x8xf32> to vector<1x1x32x8xf32>
    %113 = vector.shape_cast %112 : vector<1x1x32x8xf32> to vector<32x8xf32>
    %cst_44 = arith.constant dense<0.000000e+00> : vector<32x8xf32>
    %114 = tpu.matmul %5, %113, %cst_44 {dimension_numbers = #tpu.dot_dimension_numbers<[1], [0], [0], [1], [0, 0, 1, 1], [], []>} : vector<32x32xf32>, vector<32x8xf32>, vector<32x8xf32> -> vector<32x8xf32>
    %115 = vector.extract_strided_slice %10 {offsets = [1, 2, 0, 0], sizes = [1, 1, 1, 8], strides = [1, 1, 1, 1]} : vector<3x4x1x8xf32> to vector<1x1x1x8xf32>
    %116 = vector.shape_cast %115 : vector<1x1x1x8xf32> to vector<1x8xf32>
    %117 = vector.broadcast %116 : vector<1x8xf32> to vector<32x8xf32>
    %118 = arith.addf %114, %117 : vector<32x8xf32>
    %119 = vector.shape_cast %118 : vector<32x8xf32> to vector<4x8x8xf32>
    %120 = vector.extract_strided_slice %9 {offsets = [2, 2, 0, 0], sizes = [1, 1, 32, 8], strides = [1, 1, 1, 1]} : vector<3x4x32x8xf32> to vector<1x1x32x8xf32>
    %121 = vector.shape_cast %120 : vector<1x1x32x8xf32> to vector<32x8xf32>
    %cst_45 = arith.constant dense<0.000000e+00> : vector<32x8xf32>
    %122 = tpu.matmul %8, %121, %cst_45 {dimension_numbers = #tpu.dot_dimension_numbers<[1], [0], [0], [1], [0, 0, 1, 1], [], []>} : vector<32x32xf32>, vector<32x8xf32>, vector<32x8xf32> -> vector<32x8xf32>
    %123 = vector.extract_strided_slice %10 {offsets = [2, 2, 0, 0], sizes = [1, 1, 1, 8], strides = [1, 1, 1, 1]} : vector<3x4x1x8xf32> to vector<1x1x1x8xf32>
    %124 = vector.shape_cast %123 : vector<1x1x1x8xf32> to vector<1x8xf32>
    %125 = vector.broadcast %124 : vector<1x8xf32> to vector<32x8xf32>
    %126 = arith.addf %122, %125 : vector<32x8xf32>
    %127 = vector.shape_cast %126 : vector<32x8xf32> to vector<4x8x8xf32>
    "tpu.trace_start"() <{level = 10 : i32, message = "bqd,bkd->bqk"}> : () -> ()
    %cst_46 = arith.constant dense<0.000000e+00> : vector<4x8x8xf32>
    %128 = tpu.matmul %111, %119, %cst_46 {dimension_numbers = #tpu.dot_dimension_numbers<[2], [2], [1], [1], [0, 0, 0, 1, 1, 1], [0], [0]>} : vector<4x8x8xf32>, vector<4x8x8xf32>, vector<4x8x8xf32> -> vector<4x8x8xf32>
    %cst_47 = arith.constant -1.000000e+04 : f32
    "tpu.trace_stop"() : () -> ()
    %129 = vector.broadcast %cst_47 : f32 to vector<4x8x8xf32>
    %130 = arith.select %14, %129, %128 : vector<4x8x8xi1>, vector<4x8x8xf32>
    %cst_48 = arith.constant dense<0xFF800000> : vector<4x8xf32>
    %131 = vector.multi_reduction <maximumf>, %130, %cst_48 [2] : vector<4x8x8xf32> to vector<4x8xf32>
    %132 = vector.shape_cast %131 : vector<4x8xf32> to vector<4x8x1xf32>
    %133 = vector.broadcast %132 : vector<4x8x1xf32> to vector<4x8x8xf32>
    %134 = arith.subf %130, %133 : vector<4x8x8xf32>
    %135 = math.exp %134 : vector<4x8x8xf32>
    %cst_49 = arith.constant dense<0.000000e+00> : vector<4x8xf32>
    %136 = vector.multi_reduction <add>, %135, %cst_49 [2] : vector<4x8x8xf32> to vector<4x8xf32>
    %137 = vector.shape_cast %136 : vector<4x8xf32> to vector<4x8x1xf32>
    %138 = tpu.reciprocal %137 {approx = true} : vector<4x8x1xf32> -> vector<4x8x1xf32>
    %139 = vector.broadcast %138 : vector<4x8x1xf32> to vector<4x8x8xf32>
    %140 = arith.mulf %135, %139 : vector<4x8x8xf32>
    "tpu.trace_start"() <{level = 10 : i32, message = "bqk,bkd->bqd"}> : () -> ()
    %cst_50 = arith.constant dense<0.000000e+00> : vector<4x8x8xf32>
    %141 = tpu.matmul %140, %127, %cst_50 {dimension_numbers = #tpu.dot_dimension_numbers<[2], [1], [1], [2], [0, 0, 0, 1, 1, 2], [0], [0]>} : vector<4x8x8xf32>, vector<4x8x8xf32>, vector<4x8x8xf32> -> vector<4x8x8xf32>
    "tpu.trace_stop"() : () -> ()
    %142 = vector.shape_cast %141 : vector<4x8x8xf32> to vector<32x8xf32>
    %143 = vector.extract_strided_slice %11 {offsets = [2, 0, 0], sizes = [1, 8, 32], strides = [1, 1, 1]} : vector<4x8x32xf32> to vector<1x8x32xf32>
    %144 = vector.shape_cast %143 : vector<1x8x32xf32> to vector<8x32xf32>
    %cst_51 = arith.constant dense<0.000000e+00> : vector<32x32xf32>
    %145 = tpu.matmul %142, %144, %cst_51 {dimension_numbers = #tpu.dot_dimension_numbers<[1], [0], [0], [1], [0, 0, 1, 1], [], []>} : vector<32x8xf32>, vector<8x32xf32>, vector<32x32xf32> -> vector<32x32xf32>
    %146 = arith.addf %103, %145 : vector<32x32xf32>
    %147 = vector.extract_strided_slice %9 {offsets = [0, 3, 0, 0], sizes = [1, 1, 32, 8], strides = [1, 1, 1, 1]} : vector<3x4x32x8xf32> to vector<1x1x32x8xf32>
    %148 = vector.shape_cast %147 : vector<1x1x32x8xf32> to vector<32x8xf32>
    %cst_52 = arith.constant dense<0.000000e+00> : vector<32x8xf32>
    %149 = tpu.matmul %2, %148, %cst_52 {dimension_numbers = #tpu.dot_dimension_numbers<[1], [0], [0], [1], [0, 0, 1, 1], [], []>} : vector<32x32xf32>, vector<32x8xf32>, vector<32x8xf32> -> vector<32x8xf32>
    %150 = vector.extract_strided_slice %10 {offsets = [0, 3, 0, 0], sizes = [1, 1, 1, 8], strides = [1, 1, 1, 1]} : vector<3x4x1x8xf32> to vector<1x1x1x8xf32>
    %151 = vector.shape_cast %150 : vector<1x1x1x8xf32> to vector<1x8xf32>
    %152 = vector.broadcast %151 : vector<1x8xf32> to vector<32x8xf32>
    %153 = arith.addf %149, %152 : vector<32x8xf32>
    %154 = vector.shape_cast %153 : vector<32x8xf32> to vector<4x8x8xf32>
    %155 = vector.extract_strided_slice %9 {offsets = [1, 3, 0, 0], sizes = [1, 1, 32, 8], strides = [1, 1, 1, 1]} : vector<3x4x32x8xf32> to vector<1x1x32x8xf32>
    %156 = vector.shape_cast %155 : vector<1x1x32x8xf32> to vector<32x8xf32>
    %cst_53 = arith.constant dense<0.000000e+00> : vector<32x8xf32>
    %157 = tpu.matmul %5, %156, %cst_53 {dimension_numbers = #tpu.dot_dimension_numbers<[1], [0], [0], [1], [0, 0, 1, 1], [], []>} : vector<32x32xf32>, vector<32x8xf32>, vector<32x8xf32> -> vector<32x8xf32>
    %158 = vector.extract_strided_slice %10 {offsets = [1, 3, 0, 0], sizes = [1, 1, 1, 8], strides = [1, 1, 1, 1]} : vector<3x4x1x8xf32> to vector<1x1x1x8xf32>
    %159 = vector.shape_cast %158 : vector<1x1x1x8xf32> to vector<1x8xf32>
    %160 = vector.broadcast %159 : vector<1x8xf32> to vector<32x8xf32>
    %161 = arith.addf %157, %160 : vector<32x8xf32>
    %162 = vector.shape_cast %161 : vector<32x8xf32> to vector<4x8x8xf32>
    %163 = vector.extract_strided_slice %9 {offsets = [2, 3, 0, 0], sizes = [1, 1, 32, 8], strides = [1, 1, 1, 1]} : vector<3x4x32x8xf32> to vector<1x1x32x8xf32>
    %164 = vector.shape_cast %163 : vector<1x1x32x8xf32> to vector<32x8xf32>
    %cst_54 = arith.constant dense<0.000000e+00> : vector<32x8xf32>
    %165 = tpu.matmul %8, %164, %cst_54 {dimension_numbers = #tpu.dot_dimension_numbers<[1], [0], [0], [1], [0, 0, 1, 1], [], []>} : vector<32x32xf32>, vector<32x8xf32>, vector<32x8xf32> -> vector<32x8xf32>
    %166 = vector.extract_strided_slice %10 {offsets = [2, 3, 0, 0], sizes = [1, 1, 1, 8], strides = [1, 1, 1, 1]} : vector<3x4x1x8xf32> to vector<1x1x1x8xf32>
    %167 = vector.shape_cast %166 : vector<1x1x1x8xf32> to vector<1x8xf32>
    %168 = vector.broadcast %167 : vector<1x8xf32> to vector<32x8xf32>
    %169 = arith.addf %165, %168 : vector<32x8xf32>
    %170 = vector.shape_cast %169 : vector<32x8xf32> to vector<4x8x8xf32>
    "tpu.trace_start"() <{level = 10 : i32, message = "bqd,bkd->bqk"}> : () -> ()
    %cst_55 = arith.constant dense<0.000000e+00> : vector<4x8x8xf32>
    %171 = tpu.matmul %154, %162, %cst_55 {dimension_numbers = #tpu.dot_dimension_numbers<[2], [2], [1], [1], [0, 0, 0, 1, 1, 1], [0], [0]>} : vector<4x8x8xf32>, vector<4x8x8xf32>, vector<4x8x8xf32> -> vector<4x8x8xf32>
    %cst_56 = arith.constant -1.000000e+04 : f32
    "tpu.trace_stop"() : () -> ()
    %172 = vector.broadcast %cst_56 : f32 to vector<4x8x8xf32>
    %173 = arith.select %14, %172, %171 : vector<4x8x8xi1>, vector<4x8x8xf32>
    %cst_57 = arith.constant dense<0xFF800000> : vector<4x8xf32>
    %174 = vector.multi_reduction <maximumf>, %173, %cst_57 [2] : vector<4x8x8xf32> to vector<4x8xf32>
    %175 = vector.shape_cast %174 : vector<4x8xf32> to vector<4x8x1xf32>
    %176 = vector.broadcast %175 : vector<4x8x1xf32> to vector<4x8x8xf32>
    %177 = arith.subf %173, %176 : vector<4x8x8xf32>
    %178 = math.exp %177 : vector<4x8x8xf32>
    %cst_58 = arith.constant dense<0.000000e+00> : vector<4x8xf32>
    %179 = vector.multi_reduction <add>, %178, %cst_58 [2] : vector<4x8x8xf32> to vector<4x8xf32>
    %180 = vector.shape_cast %179 : vector<4x8xf32> to vector<4x8x1xf32>
    %181 = tpu.reciprocal %180 {approx = true} : vector<4x8x1xf32> -> vector<4x8x1xf32>
    %182 = vector.broadcast %181 : vector<4x8x1xf32> to vector<4x8x8xf32>
    %183 = arith.mulf %178, %182 : vector<4x8x8xf32>
    "tpu.trace_start"() <{level = 10 : i32, message = "bqk,bkd->bqd"}> : () -> ()
    %cst_59 = arith.constant dense<0.000000e+00> : vector<4x8x8xf32>
    %184 = tpu.matmul %183, %170, %cst_59 {dimension_numbers = #tpu.dot_dimension_numbers<[2], [1], [1], [2], [0, 0, 0, 1, 1, 2], [0], [0]>} : vector<4x8x8xf32>, vector<4x8x8xf32>, vector<4x8x8xf32> -> vector<4x8x8xf32>
    "tpu.trace_stop"() : () -> ()
    %185 = vector.shape_cast %184 : vector<4x8x8xf32> to vector<32x8xf32>
    %186 = vector.extract_strided_slice %11 {offsets = [3, 0, 0], sizes = [1, 8, 32], strides = [1, 1, 1]} : vector<4x8x32xf32> to vector<1x8x32xf32>
    %187 = vector.shape_cast %186 : vector<1x8x32xf32> to vector<8x32xf32>
    %cst_60 = arith.constant dense<0.000000e+00> : vector<32x32xf32>
    %188 = tpu.matmul %185, %187, %cst_60 {dimension_numbers = #tpu.dot_dimension_numbers<[1], [0], [0], [1], [0, 0, 1, 1], [], []>} : vector<32x8xf32>, vector<8x32xf32>, vector<32x32xf32> -> vector<32x32xf32>
    %189 = arith.addf %146, %188 : vector<32x32xf32>
    %190 = vector.shape_cast %189 : vector<32x32xf32> to vector<4x8x32xf32>
    %c0_61 = arith.constant 0 : index
    %c0_62 = arith.constant 0 : index
    %c0_63 = arith.constant 0 : index
    %191 = vector.load %arg7[%c0_61, %c0_62, %c0_63] : memref<4x8x32xf32, #tpu.memory_space<vmem>>, vector<4x8x32xf32>
    tpu.vector_store %arg7[%c0_61, %c0_62, %c0_63], %190 {strides = array<i32>} : memref<4x8x32xf32, #tpu.memory_space<vmem>>, vector<4x8x32xf32>,
    return
  }
  func.func @transform_0(%arg0: i32) -> (i32, i32, i32, i32) {
    %c0_i32 = arith.constant 0 : i32
    %c0_i32_0 = arith.constant 0 : i32
    %c0_i32_1 = arith.constant 0 : i32
    %c0_i32_2 = arith.constant 0 : i32
    return %c0_i32, %arg0, %c0_i32_0, %c0_i32_1 : i32, i32, i32, i32
  }
  func.func @transform_1(%arg0: i32) -> (i32, i32, i32) {
    %c0_i32 = arith.constant 0 : i32
    %c0_i32_0 = arith.constant 0 : i32
    %c0_i32_1 = arith.constant 0 : i32
    return %arg0, %c0_i32, %c0_i32_0 : i32, i32, i32
  }
  func.func @transform_2(%arg0: i32) -> (i32, i32, i32, i32) {
    %c0_i32 = arith.constant 0 : i32
    %c0_i32_0 = arith.constant 0 : i32
    %c0_i32_1 = arith.constant 0 : i32
    %c0_i32_2 = arith.constant 0 : i32
    %c0_i32_3 = arith.constant 0 : i32
    return %c0_i32, %c0_i32_0, %c0_i32_1, %c0_i32_2 : i32, i32, i32, i32
  }
  func.func @transform_3(%arg0: i32) -> (i32, i32, i32, i32) {
    %c0_i32 = arith.constant 0 : i32
    %c0_i32_0 = arith.constant 0 : i32
    %c0_i32_1 = arith.constant 0 : i32
    %c0_i32_2 = arith.constant 0 : i32
    %c0_i32_3 = arith.constant 0 : i32
    return %c0_i32, %c0_i32_0, %c0_i32_1, %c0_i32_2 : i32, i32, i32, i32
  }
  func.func @transform_4(%arg0: i32) -> (i32, i32, i32) {
    %c0_i32 = arith.constant 0 : i32
    %c0_i32_0 = arith.constant 0 : i32
    %c0_i32_1 = arith.constant 0 : i32
    %c0_i32_2 = arith.constant 0 : i32
    return %c0_i32, %c0_i32_0, %c0_i32_1 : i32, i32, i32
  }
  func.func @transform_5(%arg0: i32) -> (i32, i32) {
    %c0_i32 = arith.constant 0 : i32
    %c0_i32_0 = arith.constant 0 : i32
    %c0_i32_1 = arith.constant 0 : i32
    return %c0_i32, %c0_i32_0 : i32, i32
  }
  func.func @transform_6(%arg0: i32) -> (i32, i32, i32) {
    %c0_i32 = arith.constant 0 : i32
    %c0_i32_0 = arith.constant 0 : i32
    %c0_i32_1 = arith.constant 0 : i32
    return %arg0, %c0_i32, %c0_i32_0 : i32, i32, i32
  }
}

</mosaic_0001>

<bundles_post_ra>
// kernel: tpu_custom_call.1
= control target key start
LH: loop header
LB: loop body
LE: loop exit
PB: predicated region body
PF: predicated region fallthrough
CT: control target
= control target key end

     0   :  { %vm123_vm0 = vcmask 261120   ;;  %s5846_s0 = inlined_call_operand.vmem [shape: f32[3,4,8,32], index: 0, kind: input, shape index: {}]   ;;  %s5847_s1 = inlined_call_operand.vmem [shape: f32[4,8,8], index: 1, kind: input, shape index: {}]   ;;  %s5848_s2 = inlined_call_operand.vmem [shape: f32[3,4,32,8], index: 2, kind: input, shape index: {}]   ;;  %s5849_s3 = inlined_call_operand.vmem [shape: f32[3,4,1,8], index: 3, kind: input, shape index: {}]   ;;  %s5850_s4 = inlined_call_operand.vmem [shape: f32[4,8,32], index: 4, kind: input, shape index: {}]   ;;  %s5851_s5 = inlined_call_operand.vmem [shape: f32[1,32], index: 5, kind: input, shape index: {}]   ;;  %s5852_s6 = inlined_call_operand.hbm [shape: f32[4,8,32], index: 6, kind: output, shape index: {}]  }
   0x1   :  { %v38_v0 = vld [vmem:[%s5848_s2] sm:$0xff]  ;;  %v39_v1 = vld [vmem:[%s5848_s2 + $0x8] sm:$0xff]  ;;  %v40_v2 = vld [vmem:[%s5848_s2 + $0x10] sm:$0xff] }
   0x2   :  { %v4920_v3 = vpack.c.bf16 %v39_v1, %v38_v0  ;;  %v41_v4 = vld [vmem:[%s5848_s2 + $0x18] sm:$0xff]  ;;  %v5192_v5 = vld [vmem:[%s5846_s0] sm:$0xff]  ;;  %v55_v8 = vld [vmem:[%s5848_s2 + $0x88] sm:$0xff] }
   0x3   :  { %v4924_v6 = vpack.c.bf16 %v41_v4, %v40_v2  ;;  %4568 = vmatprep.mubr.msk.f32.mxu1 %vm123_vm0, %v5192_v5  ;;  %v54_v7 = vld [vmem:[%s5848_s2 + $0x80] sm:$0xff] }
   0x4   :  { %4921 = vmatprep.subr.bf16.mxu1 %v4920_v3  ;;  %v4928_v9 = vpack.c.bf16 %v55_v8, %v54_v7 }
   0x5   :  { %4923 = vmatpush3.bf16.msra.mxu1 %v4920_v3 }
   0x6   :  { %4925 = vmatprep.subr.bf16.mxu1 %v4924_v6 }
   0x7   :  { %11 = vsyncpa [#allocation3], 0  ;;  %v56_v10 = vld [vmem:[%s5848_s2 + $0x90] sm:$0xff]  ;;  %v57_v11 = vld [vmem:[%s5848_s2 + $0x98] sm:$0xff]  ;;  %v5137_v28 = vmov 0.0   ;;  %vm5138_vm1 = vmmov 0  }
   0x8   :  { %v5211_v12 = vld [vmem:[%s5846_s0 + $0x8] sm:$0xff]  ;;  %v5216_v13 = vld [vmem:[%s5846_s0 + $0x10] sm:$0xff]  ;;  %v4932_v14 = vpack.c.bf16 %v57_v11, %v56_v10  ;;  %v5225_v15 = vld [vmem:[%s5846_s0 + $0x18] sm:$0xff]  ;;  %vm427_vm2 = vcmask 64512   ;;  %s5139_s30 = smov [#allocation2]  }
   0x9   :  { %4927 = vmatpush3.bf16.msra.mxu1 %v4924_v6  ;;  %v5230_v16 = vld [vmem:[%s5846_s0 + $0x20] sm:$0xff]  ;;  %v5239_v17 = vld [vmem:[%s5846_s0 + $0x28] sm:$0xff]  ;;  %v5244_v18 = vld [vmem:[%s5846_s0 + $0x30] sm:$0xff]  ;;  %s4236_s7 = sshll.u32 %s5139_s30, 4  ;;  %s4237_s7 = int_to_ptr.vmem [resolvable:$true] %s4236_s7 }
   0xa   :  { %4929 = vmatprep.subr.bf16.mxu1 %v4928_v9  ;;  %v5253_v19 = vld [vmem:[%s5846_s0 + $0x38] sm:$0xff]  ;;  %v70_v20 = vld [vmem:[%s5848_s2 + $0x100] sm:$0xff]  ;;  %v71_v21 = vld [vmem:[%s5848_s2 + $0x108] sm:$0xff]  ;;  %p5118_p1 = scmp.lt.s32.totalorder %s4237_s7, %s4237_s7 }
   0xb   :  { %v4936_v22 = vpack.c.bf16 %v71_v21, %v70_v20  ;;  %v72_v23 = vld [vmem:[%s5848_s2 + $0x110] sm:$0xff]  ;;  %v73_v24 = vld [vmem:[%s5848_s2 + $0x118] sm:$0xff]  ;;  %v5272_v26 = vld [vmem:[%s5846_s0 + $0x40] sm:$0xff] }
   0xc   :  { %4569 = vmatmul.mubr.msk.f32.vlgmr.msra.gmra.mrb[0].mxu1 %vm123_vm0, %v5211_v12  ;;  %v4940_v25 = vpack.c.bf16 %v73_v24, %v72_v23  ;;  %4596 = vmatprep.mubr.msk.f32.mxu0 %vm123_vm0, %v5272_v26  ;;  %v5279_v27 = vld [vmem:[%s5846_s0 + $0x48] sm:$0xff]  ;;  %v5288_v29 = vld [vmem:[%s5846_s0 + $0x50] sm:$0xff]  ;;  %v5295_v30 = vld [vmem:[%s5846_s0 + $0x58] sm:$0xff] }
   0xd   :  { %4931 = vmatpush3.bf16.msra.mxu1 %v4928_v9  ;;  %4571 = vmatprep.mubr.msk.f32.mxu1 %vm123_vm0, %v5216_v13  ;;  %v4261_v35 = vld [vmem:[%s5849_s3 + $0x4] ss:$0 sm:$0xff]  ;;  %v4256_v38 = vld [vmem:[%s5849_s3] ss:$0 sm:$0xff]  ;;  %v4266_v49 = vld [vmem:[%s5849_s3 + $0x8] ss:$0 sm:$0xff] }
   0xe   :  { %4933 = vmatprep.subr.bf16.mxu1 %v4932_v14  ;;  %4937 = vmatprep.subr.bf16.mxu0 %v4936_v22  ;;  %v5341_v58 = vld [vmem:[%s5847_s1] sm:$0xff]  ;;  %v5347_v59 = vld [vmem:[%s5847_s1 + $0x8] sm:$0xff]  ;;  %v5352_v60 = vld [vmem:[%s5847_s1 + $0x10] sm:$0xff] }
   0xf   :  { %4939 = vmatpush3.bf16.msra.mxu0 %v4936_v22  ;;  %vm106_vm3 = vcmp.eq.f32.partialorder %v5341_v58, 0.0  ;;  %vm107_vm4 = vcmp.eq.f32.partialorder %v5347_v59, 0.0  ;;  %vm108_vm5 = vcmp.eq.f32.partialorder %v5352_v60, 0.0  ;;  %v5362_v1 = vld [vmem:[%s5847_s1 + $0x18] sm:$0xff] }
  0x10   :  { %4572 = vmatmul.mubr.msk.f32.gmra.mrb[2].mxu1 %vm123_vm0, %v5225_v15  ;;  %4941 = vmatprep.subr.bf16.mxu0 %v4940_v25  ;;  %vm109_vm6 = vcmp.eq.f32.partialorder %v5362_v1, 0.0 }
  0x11   :  { %4935 = vmatpush3.bf16.msra.mxu1 %v4932_v14  ;;  %4582 = vmatprep.mubr.msk.f32.mxu1 %vm123_vm0, %v5230_v16 }
  0x12   :  { %4602 = vmatprep.subr.mxu1 %v5137_v28 }
  0x13   :  { %4943 = vmatpush3.bf16.msra.mxu0 %v4940_v25 }
  0x14   :  { %4583 = vmatmul.mubr.msk.f32.vlgmr.msra.gmra.mrb[4].mxu1 %vm123_vm0, %v5239_v17  ;;  %4612 = vmatprep.subr.mxu0 %v5137_v28 }
  0x15   :  { %4585 = vmatprep.mubr.msk.f32.mxu1 %vm123_vm0, %v5244_v18 }
  0x16   :  { %4597 = vmatmul.mubr.msk.f32.vlgmr.msra.gmra.mrb[0].mxu0 %vm123_vm0, %v5279_v27 }
  0x17   :  { %4599 = vmatprep.mubr.msk.f32.mxu0 %vm123_vm0, %v5288_v29 }
  0x18   :  { %4586 = vmatmul.mubr.msk.f32.gmra.mrb[6].mxu1 %vm123_vm0, %v5253_v19 }
  0x19   :  { %4604 = vmatprep.mubr.msk.f32.mxu1 %vm5138_vm1, %v5137_v28 }
  0x1a   :  { %4600 = vmatmul.mubr.msk.f32.gmra.mrb[2].mxu0 %vm123_vm0, %v5295_v30 }
  0x1b   :  { %4614 = vmatprep.mubr.msk.f32.mxu0 %vm5138_vm1, %v5137_v28 }
  0xdf   :  { %v4570_v31 = vpop.f32.mrb[0].mxu1 }
  0xe0   :  { %v202_v32 = vpop.f32.mrb[1].mxu1  ;;  %v208_v45 = vadd.f32 %v4570_v31, %v4256_v38 }
  0xe1   :  { %v203_v41 = vadd.f32 %v4256_v38, %v202_v32 }
  0xe3   :  { %v4573_v33 = vpop.f32.mrb[2].mxu1 }
  0xe4   :  { %v212_v34 = vpop.f32.mrb[3].mxu1  ;;  %v218_v48 = vadd.f32 %v4573_v33, %v4256_v38 }
  0xe5   :  { %v213_v46 = vadd.f32 %v4256_v38, %v212_v34 }
  0xe7   :  { %v4584_v36 = vpop.f32.mrb[4].mxu1 }
  0xe8   :  { %v305_v37 = vpop.f32.mrb[5].mxu1  ;;  %v311_v43 = vadd.f32 %v4584_v36, %v4261_v35 }
  0xe9   :  { %v306_v39 = vadd.f32 %v4261_v35, %v305_v37  ;;  %v4598_v50 = vpop.f32.mrb[0].mxu0 }
  0xea   :  { %v414_v51 = vadd.f32 %v4598_v50, %v4266_v49  ;;  %v408_v52 = vpop.f32.mrb[1].mxu0 }
  0xeb   :  { %v4587_v40 = vpop.f32.mrb[6].mxu1  ;;  %4603 = vmatpush3.xpose.msk.msra.mxu1 %vm427_vm2, %v306_v39  ;;  %v409_v53 = vadd.f32 %v4266_v49, %v408_v52 }
  0xec   :  { %v315_v42 = vpop.f32.mrb[7].mxu1  ;;  %4607 = vmatprep.subr.mxu1 %v5137_v28  ;;  %v321_v47 = vadd.f32 %v4587_v40, %v4261_v35 }
  0xed   :  { %v316_v44 = vadd.f32 %v4261_v35, %v315_v42  ;;  %v4601_v54 = vpop.f32.mrb[2].mxu0 }
  0xee   :  { %4605 = vmatmul.mubr.msk.f32.vlgmr.msra.gmra.mrb[8].mxu1 %vm427_vm2, %v203_v41  ;;  %v5333_v55 = vadd.f32 %v4601_v54, %v4266_v49  ;;  %v418_v56 = vpop.f32.mrb[3].mxu0 }
  0xef   :  { %4608 = vmatpush3.xpose.msk.msra.mxu1 %vm427_vm2, %v311_v43  ;;  %4613 = vmatpush3.xpose.msk.msra.mxu0 %vm427_vm2, %v316_v44  ;;  %v5336_v57 = vadd.f32 %v4266_v49, %v418_v56 }
  0xf0   :  { %4609 = vmatprep.mubr.msk.f32.mxu1 %vm5138_vm1, %v5137_v28  ;;  %4617 = vmatprep.subr.mxu1 %v5137_v28 }
  0xf1   :  { %4622 = vmatprep.subr.mxu0 %v5137_v28 }
  0xf2   :  { %4610 = vmatmul.mubr.msk.f32.vlgmr.msra.gmra.mrb[10].mxu1 %vm427_vm2, %v208_v45  ;;  %4615 = vmatmul.mubr.msk.f32.vlgmr.msra.gmra.mrb[4].mxu0 %vm427_vm2, %v213_v46 }
  0xf3   :  { %4618 = vmatpush3.xpose.msk.msra.mxu1 %vm427_vm2, %v321_v47  ;;  %4619 = vmatprep.mubr.msk.f32.mxu1 %vm5138_vm1, %v5137_v28 }
  0xf4   :  { %4627 = vmatprep.subr.mxu1 %v5137_v28  ;;  %4624 = vmatprep.mubr.msk.f32.mxu0 %vm5138_vm1, %v5137_v28 }
  0xf5   :  { %4623 = vmatpush3.msra.mxu0 %v409_v53 }
  0xf6   :  { %4620 = vmatmul.mubr.msk.f32.vlgmr.msra.gmra.mrb[12].mxu1 %vm427_vm2, %v218_v48  ;;  %4632 = vmatprep.subr.mxu0 %v5137_v28 }
  0xf7   :  { %4629 = vmatprep.mubr.msk.f32.mxu1 %vm5138_vm1, %v5137_v28  ;;  %4628 = vmatpush3.msra.mxu1 %v414_v51 }
  0xf8   :  { %4637 = vmatprep.subr.mxu1 %v5137_v28 }
 0x1c1   :  { %v500_v61 = vpop.f32.mrb[8].mxu1 }
 0x1c2   :  { %v732_v62 = vsel %vm106_vm3, -10000.0, %v500_v61  ;;  %v4606_v63 = vpop.f32.mrb[9].mxu1 }
 0x1c3   :  { %v736_v0 = vsel %vm427_vm2, %v732_v62, -inf }
 0x1c4   :  { %737 = vmax.xlane.f32.xlu0 %v736_v0  ;;  %v58_v0 = vld [vmem:[%s5848_s2 + $0xa0] sm:$0xff] }
 0x1c5   :  { %v576_v2 = vpop.f32.mrb[10].mxu1  ;;  %v652_v3 = vpop.f32.mrb[4].mxu0 }
 0x1c6   :  { %v733_v4 = vsel %vm107_vm4, -10000.0, %v576_v2  ;;  %v734_v6 = vsel %vm108_vm5, -10000.0, %v652_v3  ;;  %v4611_v7 = vpop.f32.mrb[11].mxu1  ;;  %v4616_v8 = vpop.f32.mrb[5].mxu0  ;;  %v42_v3 = vld [vmem:[%s5848_s2 + $0x20] sm:$0xff] }
 0x1c7   :  { %v742_v9 = vsel %vm427_vm2, %v734_v6, -inf  ;;  %v739_v10 = vsel %vm427_vm2, %v733_v4, -inf  ;;  %v44_v7 = vld [vmem:[%s5848_s2 + $0x30] sm:$0xff]  ;;  %v45_v8 = vld [vmem:[%s5848_s2 + $0x38] sm:$0xff] }
 0x1c8   :  { %743 = vmax.xlane.f32.xlu1 %v742_v9  ;;  %740 = vmax.xlane.f32.xlu0 %v739_v10  ;;  %v4948_v9 = vpack.c.bf16 %v45_v8, %v44_v7  ;;  %v74_v10 = vld [vmem:[%s5848_s2 + $0x120] sm:$0xff] }
 0x1c9   :  { %v728_v11 = vpop.f32.mrb[12].mxu1 }
 0x1ca   :  { %v735_v14 = vsel %vm109_vm6, -10000.0, %v728_v11  ;;  %v4621_v20 = vpop.f32.mrb[13].mxu1  ;;  %v75_v11 = vld [vmem:[%s5848_s2 + $0x128] sm:$0xff] }
 0x1cb   :  { %v745_v21 = vsel %vm427_vm2, %v735_v14, -inf  ;;  %v4960_v20 = vpack.c.bf16 %v75_v11, %v74_v10 }
 0x1cc   :  { %746 = vmax.xlane.f32.xlu1 %v745_v21  ;;  %v77_v21 = vld [vmem:[%s5848_s2 + $0x138] sm:$0xff] }
 0x251   :  { %v738_v22 = vpop.xlane.xlu0 %737 }
 0x252   :  { %v748_v23 = vsub.f32 %v732_v62, %v738_v22 }
 0x254   :  { %v752_v24 = vmul.f32 1.442695, %v748_v23 }
 0x255   :  { %v744_v25 = vpop.xlane.xlu1 %743  ;;  %v741_v31 = vpop.xlane.xlu0 %740 }
 0x256   :  { %5037 = vpow2.f32 %v752_v24  ;;  %v750_v32 = vsub.f32 %v734_v6, %v744_v25  ;;  %v749_v33 = vsub.f32 %v733_v4, %v741_v31  ;;  %v43_v4 = vld [vmem:[%s5848_s2 + $0x28] sm:$0xff]  ;;  %v60_v25 = vld [vmem:[%s5848_s2 + $0xb0] sm:$0xff]  ;;  %v61_v31 = vld [vmem:[%s5848_s2 + $0xb8] sm:$0xff] }
 0x257   :  { %v4944_v6 = vpack.c.bf16 %v43_v4, %v42_v3 }
 0x258   :  { %v756_v34 = vmul.f32 1.442695, %v750_v32  ;;  %v754_v35 = vmul.f32 1.442695, %v749_v33  ;;  %v4956_v33 = vpack.c.bf16 %v61_v31, %v60_v25 }
 0x259   :  { %v747_v36 = vpop.xlane.xlu1 %746 }
 0x25a   :  { %5039 = vpow2.f32 %v756_v34  ;;  %v751_v37 = vsub.f32 %v735_v14, %v747_v36  ;;  %v76_v14 = vld [vmem:[%s5848_s2 + $0x130] sm:$0xff] }
 0x25b   :  { %5041 = vpow2.f32 %v754_v35  ;;  %v4964_v22 = vpack.c.bf16 %v77_v21, %v76_v14 }
 0x25c   :  { %v758_v38 = vmul.f32 1.442695, %v751_v37 }
 0x25e   :  { %5043 = vpow2.f32 %v758_v38 }
 0x260   :  { %v5038_v39 = vpop.eup %5037 }
 0x261   :  { %v760_v40 = vsel %vm427_vm2, %v5038_v39, 0.0 }
 0x262   :  { %761 = vadd.xlane.f32.xlu0 %v760_v40 }
 0x264   :  { %v5040_v41 = vpop.eup %5039 }
 0x265   :  { %v5042_v42 = vpop.eup %5041  ;;  %v766_v43 = vsel %vm427_vm2, %v5040_v41, 0.0 }
 0x266   :  { %767 = vadd.xlane.f32.xlu0 %v766_v43  ;;  %v763_v44 = vsel %vm427_vm2, %v5042_v42, 0.0 }
 0x267   :  { %764 = vadd.xlane.f32.xlu1 %v763_v44 }
 0x268   :  { %v5044_v45 = vpop.eup %5043 }
 0x269   :  { %v769_v46 = vsel %vm427_vm2, %v5044_v45, 0.0 }
 0x26b   :  { %770 = vadd.xlane.f32.xlu1 %v769_v46 }
 0x2ef   :  { %v762_v47 = vpop.xlane.xlu0 %761 }
 0x2f0   :  { %5045 = vrcp.f32 %v762_v47  ;;  %v4287_v47 = vld [vmem:[%s5849_s3 + $0x1] ss:$0 sm:$0xff] }
 0x2f3   :  { %v768_v48 = vpop.xlane.xlu0 %767 }
 0x2f4   :  { %5047 = vrcp.f32 %v768_v48  ;;  %v765_v49 = vpop.xlane.xlu1 %764 }
 0x2f5   :  { %5049 = vrcp.f32 %v765_v49 }
 0x2f8   :  { %v771_v50 = vpop.xlane.xlu1 %770 }
 0x2f9   :  { %5051 = vrcp.f32 %v771_v50 }
 0x2fa   :  { %v5046_v51 = vpop.eup %5045 }
 0x2fb   :  { %v776_v52 = vmul.f32 %v5046_v51, %v5038_v39 }
 0x2fd   :  { %4625 = vmatmul.mubr.msk.f32.vlgmr.msra.gmra.mrb[6].mxu0 %vm427_vm2, %v776_v52 }
 0x2fe   :  { %v5048_v53 = vpop.eup %5047  ;;  %4633 = vmatpush3.msra.mxu0 %v5336_v57  ;;  %4634 = vmatprep.mubr.msk.f32.mxu0 %vm5138_vm1, %v5137_v28  ;;  %v98_v57 = vld [vmem:[%s5850_s4] sm:$0xff] }
 0x2ff   :  { %v5050_v54 = vpop.eup %5049  ;;  %v778_v56 = vmul.f32 %v5048_v53, %v5040_v41  ;;  %4642 = vmatprep.subr.mxu0 %v98_v57 }
 0x300   :  { %v777_v61 = vmul.f32 %v5050_v54, %v5042_v42 }
 0x301   :  { %4635 = vmatmul.mubr.msk.f32.vlgmr.msra.gmra.mrb[8].mxu0 %vm427_vm2, %v778_v56  ;;  %v5472_v56 = vld [vmem:[%s5849_s3 + $0x9] ss:$0 sm:$0xff] }
 0x302   :  { %4630 = vmatmul.mubr.msk.f32.vlgmr.msra.gmra.mrb[14].mxu1 %vm427_vm2, %v777_v61  ;;  %4643 = vmatpush3.msra.mxu0 %v98_v57 }
 0x303   :  { %v5052_v62 = vpop.eup %5051  ;;  %4638 = vmatpush3.msra.mxu1 %v5333_v55  ;;  %4639 = vmatprep.mubr.msk.f32.mxu1 %vm5138_vm1, %v5137_v28  ;;  %v59_v55 = vld [vmem:[%s5848_s2 + $0xa8] sm:$0xff] }
 0x304   :  { %v779_v63 = vmul.f32 %v5052_v62, %v5044_v45  ;;  %v4952_v2 = vpack.c.bf16 %v59_v55, %v58_v0  ;;  %4945 = vmatprep.subr.bf16.mxu1 %v4944_v6  ;;  %v4292_v45 = vld [vmem:[%s5849_s3 + $0x5] ss:$0 sm:$0xff] }
 0x306   :  { %4640 = vmatmul.mubr.msk.f32.vlgmr.msra.gmra.mrb[16].mxu1 %vm427_vm2, %v779_v63  ;;  %4953 = vmatprep.subr.bf16.mxu0 %v4952_v2 }
 0x307   :  { %4658 = vmatprep.mubr.msk.f32.mxu1 %vm123_vm0, %v5192_v5  ;;  %4947 = vmatpush3.bf16.msra.mxu1 %v4944_v6 }
 0x308   :  { %4949 = vmatprep.subr.bf16.mxu1 %v4948_v9 }
 0x30b   :  { %4951 = vmatpush3.bf16.msra.mxu1 %v4948_v9 }
 0x30c   :  { %4961 = vmatprep.subr.bf16.mxu1 %v4960_v20 }
 0x30e   :  { %4659 = vmatmul.mubr.msk.f32.vlgmr.msra.gmra.mrb[18].mxu1 %vm123_vm0, %v5211_v12 }
 0x30f   :  { %4661 = vmatprep.mubr.msk.f32.mxu1 %vm123_vm0, %v5216_v13  ;;  %4963 = vmatpush3.bf16.msra.mxu1 %v4960_v20 }
 0x310   :  { %4965 = vmatprep.subr.bf16.mxu1 %v4964_v22 }
 0x312   :  { %4662 = vmatmul.mubr.msk.f32.gmra.mrb[20].mxu1 %vm123_vm0, %v5225_v15 }
 0x313   :  { %4686 = vmatprep.mubr.msk.f32.mxu1 %vm123_vm0, %v5272_v26  ;;  %4967 = vmatpush3.bf16.msra.mxu1 %v4964_v22 }
 0x314   :  { %4702 = vmatprep.subr.mxu1 %v5137_v28 }
 0x316   :  { %4687 = vmatmul.mubr.msk.f32.vlgmr.msra.gmra.mrb[22].mxu1 %vm123_vm0, %v5279_v27 }
 0x317   :  { %4689 = vmatprep.mubr.msk.f32.mxu1 %vm123_vm0, %v5288_v29 }
 0x31a   :  { %4690 = vmatmul.mubr.msk.f32.gmra.mrb[24].mxu1 %vm123_vm0, %v5295_v30 }
 0x31b   :  { %4704 = vmatprep.mubr.msk.f32.mxu1 %vm5138_vm1, %v5137_v28 }
 0x3d0   :  { %v849_v23 = vpop.f32.mrb[6].mxu0 }
 0x3d1   :  { %v4626_v24 = vpop.f32.mrb[7].mxu0  ;;  %4644 = vmatprep.mubr.msk.f32.mxu0 %vm427_vm2, %v849_v23 }
 0x3d4   :  { %v995_v32 = vpop.f32.mrb[8].mxu0 }
 0x3d5   :  { %v922_v34 = vpop.f32.mrb[14].mxu1  ;;  %v4636_v35 = vpop.f32.mrb[9].mxu0 }
 0x3d6   :  { %v4631_v36 = vpop.f32.mrb[15].mxu1  ;;  %4645 = vmatmul.mubr.msk.f32.vlgmr.msra.gmra.mrb[10].mxu0 %vm427_vm2, %v922_v34 }
 0x3d7   :  { %4647 = vmatprep.mubr.msk.f32.mxu0 %vm427_vm2, %v995_v32  ;;  %4955 = vmatpush3.bf16.msra.mxu0 %v4952_v2 }
 0x3d8   :  { %4957 = vmatprep.subr.bf16.mxu0 %v4956_v33 }
 0x3d9   :  { %v1068_v37 = vpop.f32.mrb[16].mxu1 }
 0x3da   :  { %v4641_v38 = vpop.f32.mrb[17].mxu1  ;;  %4648 = vmatmul.mubr.msk.f32.gmra.mrb[12].mxu0 %vm427_vm2, %v1068_v37 }
 0x3db   :  { %4959 = vmatpush3.bf16.msra.mxu0 %v4956_v33  ;;  %4672 = vmatprep.mubr.msk.f32.mxu0 %vm123_vm0, %v5230_v16 }
 0x3dc   :  { %4692 = vmatprep.subr.mxu0 %v5137_v28 }
 0x3de   :  { %4673 = vmatmul.mubr.msk.f32.vlgmr.msra.gmra.mrb[14].mxu0 %vm123_vm0, %v5239_v17 }
 0x3df   :  { %4675 = vmatprep.mubr.msk.f32.mxu0 %vm123_vm0, %v5244_v18 }
 0x3e1   :  { %v4660_v39 = vpop.f32.mrb[18].mxu1 }
 0x3e2   :  { %4676 = vmatmul.mubr.msk.f32.gmra.mrb[16].mxu0 %vm123_vm0, %v5253_v19  ;;  %v1245_v40 = vpop.f32.mrb[19].mxu1  ;;  %v1251_v62 = vadd.f32 %v4660_v39, %v4287_v47 }
 0x3e3   :  { %4694 = vmatprep.mubr.msk.f32.mxu0 %vm5138_vm1, %v5137_v28  ;;  %v1246_v50 = vadd.f32 %v4287_v47, %v1245_v40 }
 0x3e5   :  { %v4663_v41 = vpop.f32.mrb[20].mxu1 }
 0x3e6   :  { %v1255_v42 = vpop.f32.mrb[21].mxu1  ;;  %v1261_v55 = vadd.f32 %v4663_v41, %v4287_v47 }
 0x3e7   :  { %v1256_v61 = vadd.f32 %v4287_v47, %v1255_v42 }
 0x3e9   :  { %v4688_v43 = vpop.f32.mrb[22].mxu1 }
 0x3ea   :  { %v1427_v44 = vpop.f32.mrb[23].mxu1  ;;  %v1433_v0 = vadd.f32 %v4688_v43, %v5472_v56 }
 0x3eb   :  { %v1428_v63 = vadd.f32 %v5472_v56, %v1427_v44 }
 0x3ed   :  { %v5496_v2 = vpop.f32.mrb[24].mxu1 }
 0x3ee   :  { %v1437_v3 = vpop.f32.mrb[25].mxu1 }
 0x4b1   :  { %v4674_v46 = vpop.f32.mrb[14].mxu0 }
 0x4b2   :  { %v1336_v48 = vpop.f32.mrb[15].mxu0  ;;  %v1342_v53 = vadd.f32 %v4674_v46, %v4292_v45 }
 0x4b3   :  { %v1337_v49 = vadd.f32 %v4292_v45, %v1336_v48 }
 0x4b5   :  { %v4677_v51 = vpop.f32.mrb[16].mxu0  ;;  %4693 = vmatpush3.xpose.msk.msra.mxu0 %vm427_vm2, %v1337_v49 }
 0x4b6   :  { %v1346_v52 = vpop.f32.mrb[17].mxu0  ;;  %4697 = vmatprep.subr.mxu0 %v5137_v28  ;;  %v1352_v57 = vadd.f32 %v4677_v51, %v4292_v45 }
 0x4b7   :  { %v1347_v54 = vadd.f32 %v4292_v45, %v1346_v52 }
 0x4b8   :  { %4695 = vmatmul.mubr.msk.f32.vlgmr.msra.gmra.mrb[18].mxu0 %vm427_vm2, %v1246_v50 }
 0x4b9   :  { %4698 = vmatpush3.xpose.msk.msra.mxu0 %vm427_vm2, %v1342_v53  ;;  %4703 = vmatpush3.xpose.msk.msra.mxu1 %vm427_vm2, %v1347_v54 }
 0x4ba   :  { %4699 = vmatprep.mubr.msk.f32.mxu0 %vm5138_vm1, %v5137_v28  ;;  %4707 = vmatprep.subr.mxu0 %v5137_v28 }
 0x4bb   :  { %4712 = vmatprep.subr.mxu1 %v5137_v28 }
 0x4bc   :  { %4700 = vmatmul.mubr.msk.f32.vlgmr.msra.gmra.mrb[20].mxu0 %vm427_vm2, %v1251_v62  ;;  %4705 = vmatmul.mubr.msk.f32.vlgmr.msra.gmra.mrb[26].mxu1 %vm427_vm2, %v1256_v61 }
 0x4bd   :  { %4708 = vmatpush3.xpose.msk.msra.mxu0 %vm427_vm2, %v1352_v57  ;;  %4709 = vmatprep.mubr.msk.f32.mxu0 %vm5138_vm1, %v5137_v28 }
 0x4be   :  { %4717 = vmatprep.subr.mxu0 %v5137_v28  ;;  %4713 = vmatpush3.msra.mxu1 %v1428_v63 }
 0x4bf   :  { %4714 = vmatprep.mubr.msk.f32.mxu1 %vm5138_vm1, %v5137_v28  ;;  %4722 = vmatprep.subr.mxu1 %v5137_v28 }
 0x4c0   :  { %4710 = vmatmul.mubr.msk.f32.vlgmr.msra.gmra.mrb[22].mxu0 %vm427_vm2, %v1261_v55 }
 0x4c1   :  { %4718 = vmatpush3.msra.mxu0 %v1433_v0  ;;  %4719 = vmatprep.mubr.msk.f32.mxu0 %vm5138_vm1, %v5137_v28  ;;  %v1438_v0 = vadd.f32 %v5472_v56, %v1437_v3 }
 0x4c2   :  { %4727 = vmatprep.subr.mxu0 %v5137_v28 }
 0x58b   :  { %v1518_v4 = vpop.f32.mrb[18].mxu0 }
 0x58c   :  { %v1750_v6 = vsel %vm106_vm3, -10000.0, %v1518_v4  ;;  %v4696_v7 = vpop.f32.mrb[19].mxu0 }
 0x58d   :  { %v1754_v8 = vsel %vm427_vm2, %v1750_v6, -inf }
 0x58e   :  { %1755 = vmax.xlane.f32.xlu0 %v1754_v8  ;;  %v1443_v8 = vadd.f32 %v5496_v2, %v5472_v56  ;;  %v62_v56 = vld [vmem:[%s5848_s2 + $0xc0] sm:$0xff] }
 0x58f   :  { %v1594_v9 = vpop.f32.mrb[20].mxu0  ;;  %v1670_v10 = vpop.f32.mrb[26].mxu1 }
 0x590   :  { %v1751_v11 = vsel %vm107_vm4, -10000.0, %v1594_v9  ;;  %v1752_v14 = vsel %vm108_vm5, -10000.0, %v1670_v10  ;;  %v4701_v20 = vpop.f32.mrb[21].mxu0  ;;  %v4706_v21 = vpop.f32.mrb[27].mxu1  ;;  %v99_v10 = vld [vmem:[%s5850_s4 + $0x8] sm:$0xff] }
 0x591   :  { %v1760_v22 = vsel %vm427_vm2, %v1752_v14, -inf  ;;  %v1757_v23 = vsel %vm427_vm2, %v1751_v11, -inf  ;;  %v48_v21 = vld [vmem:[%s5848_s2 + $0x50] sm:$0xff] }
 0x592   :  { %1761 = vmax.xlane.f32.xlu0 %v1760_v22  ;;  %1758 = vmax.xlane.f32.xlu1 %v1757_v23  ;;  %v49_v22 = vld [vmem:[%s5848_s2 + $0x58] sm:$0xff] }
 0x593   :  { %v1746_v24 = vpop.f32.mrb[22].mxu0  ;;  %v4972_v23 = vpack.c.bf16 %v49_v22, %v48_v21 }
 0x594   :  { %v1753_v25 = vsel %vm109_vm6, -10000.0, %v1746_v24  ;;  %v4711_v31 = vpop.f32.mrb[23].mxu0  ;;  %v78_v24 = vld [vmem:[%s5848_s2 + $0x140] sm:$0xff] }
 0x595   :  { %v1763_v32 = vsel %vm427_vm2, %v1753_v25, -inf  ;;  %v80_v31 = vld [vmem:[%s5848_s2 + $0x150] sm:$0xff] }
 0x596   :  { %1764 = vmax.xlane.f32.xlu1 %v1763_v32 }
 0x61b   :  { %v1756_v33 = vpop.xlane.xlu0 %1755 }
 0x61c   :  { %v1766_v34 = vsub.f32 %v1750_v6, %v1756_v33 }
 0x61e   :  { %v1770_v35 = vmul.f32 1.442695, %v1766_v34 }
 0x61f   :  { %v1762_v36 = vpop.xlane.xlu0 %1761  ;;  %v1759_v37 = vpop.xlane.xlu1 %1758 }
 0x620   :  { %5053 = vpow2.f32 %v1770_v35  ;;  %v1768_v38 = vsub.f32 %v1752_v14, %v1762_v36  ;;  %v1767_v39 = vsub.f32 %v1751_v11, %v1759_v37  ;;  %v46_v11 = vld [vmem:[%s5848_s2 + $0x40] sm:$0xff]  ;;  %v47_v14 = vld [vmem:[%s5848_s2 + $0x48] sm:$0xff] }
 0x621   :  { %v4968_v20 = vpack.c.bf16 %v47_v14, %v46_v11 }
 0x622   :  { %v1774_v40 = vmul.f32 1.442695, %v1768_v38  ;;  %v1772_v41 = vmul.f32 1.442695, %v1767_v39 }
 0x623   :  { %v1765_v42 = vpop.xlane.xlu1 %1764 }
 0x624   :  { %5055 = vpow2.f32 %v1774_v40  ;;  %v1769_v43 = vsub.f32 %v1753_v25, %v1765_v42  ;;  %v79_v25 = vld [vmem:[%s5848_s2 + $0x148] sm:$0xff] }
 0x625   :  { %5057 = vpow2.f32 %v1772_v41  ;;  %v4984_v32 = vpack.c.bf16 %v79_v25, %v78_v24 }
 0x626   :  { %v1776_v44 = vmul.f32 1.442695, %v1769_v43 }
 0x628   :  { %5059 = vpow2.f32 %v1776_v44  ;;  %v4328_v44 = vld [vmem:[%s5849_s3 + $0xa] ss:$0 sm:$0xff] }
 0x62a   :  { %v5054_v45 = vpop.eup %5053 }
 0x62b   :  { %v1778_v46 = vsel %vm427_vm2, %v5054_v45, 0.0 }
 0x62c   :  { %1779 = vadd.xlane.f32.xlu0 %v1778_v46 }
 0x62e   :  { %v5056_v47 = vpop.eup %5055 }
 0x62f   :  { %v5058_v48 = vpop.eup %5057  ;;  %v1784_v49 = vsel %vm427_vm2, %v5056_v47, 0.0 }
 0x630   :  { %1785 = vadd.xlane.f32.xlu0 %v1784_v49  ;;  %v1781_v50 = vsel %vm427_vm2, %v5058_v48, 0.0 }
 0x631   :  { %1782 = vadd.xlane.f32.xlu1 %v1781_v50 }
 0x632   :  { %v5060_v51 = vpop.eup %5059 }
 0x633   :  { %v1787_v52 = vsel %vm427_vm2, %v5060_v51, 0.0 }
 0x635   :  { %1788 = vadd.xlane.f32.xlu1 %v1787_v52 }
 0x6b9   :  { %v1780_v53 = vpop.xlane.xlu0 %1779 }
 0x6ba   :  { %5061 = vrcp.f32 %v1780_v53 }
 0x6bd   :  { %v1786_v54 = vpop.xlane.xlu0 %1785 }
 0x6be   :  { %5063 = vrcp.f32 %v1786_v54  ;;  %v1783_v61 = vpop.xlane.xlu1 %1782 }
 0x6bf   :  { %5065 = vrcp.f32 %v1783_v61 }
 0x6c2   :  { %v1789_v62 = vpop.xlane.xlu1 %1788 }
 0x6c3   :  { %5067 = vrcp.f32 %v1789_v62 }
 0x6c4   :  { %v5062_v63 = vpop.eup %5061 }
 0x6c5   :  { %v1794_v57 = vmul.f32 %v5062_v63, %v5054_v45 }
 0x6c7   :  { %4715 = vmatmul.mubr.msk.f32.vlgmr.msra.gmra.mrb[28].mxu1 %vm427_vm2, %v1794_v57 }
 0x6c8   :  { %v5064_v55 = vpop.eup %5063  ;;  %4723 = vmatpush3.msra.mxu1 %v1438_v0  ;;  %4724 = vmatprep.mubr.msk.f32.mxu1 %vm5138_vm1, %v5137_v28 }
 0x6c9   :  { %v5066_v4 = vpop.eup %5065  ;;  %v1796_v6 = vmul.f32 %v5064_v55, %v5056_v47  ;;  %4969 = vmatprep.subr.bf16.mxu1 %v4968_v20  ;;  %v4318_v47 = vld [vmem:[%s5849_s3 + $0x2] ss:$0 sm:$0xff] }
 0x6ca   :  { %v1795_v7 = vmul.f32 %v5066_v4, %v5058_v48 }
 0x6cb   :  { %4725 = vmatmul.mubr.msk.f32.vlgmr.msra.gmra.mrb[30].mxu1 %vm427_vm2, %v1796_v6 }
 0x6cc   :  { %4720 = vmatmul.mubr.msk.f32.vlgmr.msra.gmra.mrb[24].mxu0 %vm427_vm2, %v1795_v7  ;;  %4748 = vmatprep.mubr.msk.f32.mxu1 %vm123_vm0, %v5192_v5  ;;  %v63_v5 = vld [vmem:[%s5848_s2 + $0xc8] sm:$0xff] }
 0x6cd   :  { %v5068_v3 = vpop.eup %5067  ;;  %4728 = vmatpush3.msra.mxu0 %v1443_v8  ;;  %4729 = vmatprep.mubr.msk.f32.mxu0 %vm5138_vm1, %v5137_v28  ;;  %v4976_v2 = vpack.c.bf16 %v63_v5, %v62_v56 }
 0x6ce   :  { %v1797_v9 = vmul.f32 %v5068_v3, %v5060_v51  ;;  %4732 = vmatprep.subr.mxu0 %v99_v10  ;;  %4971 = vmatpush3.bf16.msra.mxu1 %v4968_v20 }
 0x6cf   :  { %4973 = vmatprep.subr.bf16.mxu1 %v4972_v23 }
 0x6d0   :  { %4730 = vmatmul.mubr.msk.f32.vlgmr.msra.gmra.mrb[26].mxu0 %vm427_vm2, %v1797_v9 }
 0x6d1   :  { %4733 = vmatpush3.msra.mxu0 %v99_v10 }
 0x6d2   :  { %4977 = vmatprep.subr.bf16.mxu0 %v4976_v2  ;;  %4975 = vmatpush3.bf16.msra.mxu1 %v4972_v23 }
 0x6d3   :  { %4985 = vmatprep.subr.bf16.mxu1 %v4984_v32 }
 0x6d5   :  { %4749 = vmatmul.mubr.msk.f32.vlgmr.msra.gmra.mrb[32].mxu1 %vm123_vm0, %v5211_v12  ;;  %v81_v12 = vld [vmem:[%s5848_s2 + $0x158] sm:$0xff] }
 0x6d6   :  { %4751 = vmatprep.mubr.msk.f32.mxu1 %vm123_vm0, %v5216_v13  ;;  %v4988_v33 = vpack.c.bf16 %v81_v12, %v80_v31  ;;  %4987 = vmatpush3.bf16.msra.mxu1 %v4984_v32 }
 0x6d8   :  { %4989 = vmatprep.subr.bf16.mxu1 %v4988_v33 }
 0x6d9   :  { %4752 = vmatmul.mubr.msk.f32.gmra.mrb[34].mxu1 %vm123_vm0, %v5225_v15 }
 0x6da   :  { %4776 = vmatprep.mubr.msk.f32.mxu1 %vm123_vm0, %v5272_v26  ;;  %4991 = vmatpush3.bf16.msra.mxu1 %v4988_v33  ;;  %v64_v26 = vld [vmem:[%s5848_s2 + $0xd0] sm:$0xff] }
 0x6db   :  { %4787 = vmatprep.subr.mxu1 %v5137_v28 }
 0x6dd   :  { %4777 = vmatmul.mubr.msk.f32.vlgmr.msra.gmra.mrb[36].mxu1 %vm123_vm0, %v5279_v27  ;;  %v65_v27 = vld [vmem:[%s5848_s2 + $0xd8] sm:$0xff] }
 0x6de   :  { %4779 = vmatprep.mubr.msk.f32.mxu1 %vm123_vm0, %v5288_v29  ;;  %v4980_v29 = vpack.c.bf16 %v65_v27, %v64_v26 }
 0x6e1   :  { %4780 = vmatmul.mubr.msk.f32.gmra.mrb[38].mxu1 %vm123_vm0, %v5295_v30 }
 0x6e2   :  { %4789 = vmatprep.mubr.msk.f32.mxu1 %vm5138_vm1, %v5137_v28 }
 0x79a   :  { %v1867_v13 = vpop.f32.mrb[28].mxu1 }
 0x79b   :  { %v4716_v15 = vpop.f32.mrb[29].mxu1  ;;  %4734 = vmatprep.mubr.msk.f32.mxu0 %vm427_vm2, %v1867_v13 }
 0x79e   :  { %v2013_v34 = vpop.f32.mrb[30].mxu1 }
 0x79f   :  { %v1940_v35 = vpop.f32.mrb[24].mxu0  ;;  %v4726_v36 = vpop.f32.mrb[31].mxu1 }
 0x7a0   :  { %v4721_v30 = vpop.f32.mrb[25].mxu0  ;;  %4735 = vmatmul.mubr.msk.f32.vlgmr.msra.gmra.mrb[10].mxu0 %vm427_vm2, %v1940_v35 }
 0x7a1   :  { %4737 = vmatprep.mubr.msk.f32.mxu0 %vm427_vm2, %v2013_v34  ;;  %4979 = vmatpush3.bf16.msra.mxu0 %v4976_v2 }
 0x7a2   :  { %4981 = vmatprep.subr.bf16.mxu0 %v4980_v29 }
 0x7a3   :  { %v2086_v37 = vpop.f32.mrb[26].mxu0 }
 0x7a4   :  { %v4731_v38 = vpop.f32.mrb[27].mxu0  ;;  %4738 = vmatmul.mubr.msk.f32.gmra.mrb[12].mxu0 %vm427_vm2, %v2086_v37 }
 0x7a5   :  { %4983 = vmatpush3.bf16.msra.mxu0 %v4980_v29  ;;  %4762 = vmatprep.mubr.msk.f32.mxu0 %vm123_vm0, %v5230_v16 }
 0x7a6   :  { %4782 = vmatprep.subr.mxu0 %v5137_v28 }
 0x7a8   :  { %4763 = vmatmul.mubr.msk.f32.vlgmr.msra.gmra.mrb[28].mxu0 %vm123_vm0, %v5239_v17  ;;  %v4750_v39 = vpop.f32.mrb[32].mxu1 }
 0x7a9   :  { %4765 = vmatprep.mubr.msk.f32.mxu0 %vm123_vm0, %v5244_v18  ;;  %v2263_v40 = vpop.f32.mrb[33].mxu1  ;;  %v2269_v52 = vadd.f32 %v4750_v39, %v4318_v47 }
 0x7aa   :  { %v2264_v53 = vadd.f32 %v4318_v47, %v2263_v40 }
 0x7ac   :  { %4766 = vmatmul.mubr.msk.f32.gmra.mrb[30].mxu0 %vm123_vm0, %v5253_v19  ;;  %v4753_v41 = vpop.f32.mrb[34].mxu1  ;;  %v4323_v19 = vld [vmem:[%s5849_s3 + $0x6] ss:$0 sm:$0xff] }
 0x7ad   :  { %4784 = vmatprep.mubr.msk.f32.mxu0 %vm5138_vm1, %v5137_v28  ;;  %v2273_v42 = vpop.f32.mrb[35].mxu1  ;;  %v2279_v57 = vadd.f32 %v4753_v41, %v4318_v47 }
 0x7ae   :  { %v2274_v0 = vadd.f32 %v4318_v47, %v2273_v42 }
 0x7b0   :  { %v4778_v43 = vpop.f32.mrb[36].mxu1 }
 0x7b1   :  { %v2445_v16 = vpop.f32.mrb[37].mxu1  ;;  %v2451_v55 = vadd.f32 %v4778_v43, %v4328_v44 }
 0x7b2   :  { %v2446_v4 = vadd.f32 %v4328_v44, %v2445_v16 }
 0x7b4   :  { %v4781_v17 = vpop.f32.mrb[38].mxu1 }
 0x7b5   :  { %v5601_v45 = vadd.f32 %v4781_v17, %v4328_v44  ;;  %v2455_v18 = vpop.f32.mrb[39].mxu1 }
 0x7b6   :  { %v5603_v46 = vadd.f32 %v4328_v44, %v2455_v18 }
 0x87b   :  { %v4764_v48 = vpop.f32.mrb[28].mxu0 }
 0x87c   :  { %v2360_v49 = vadd.f32 %v4764_v48, %v4323_v19  ;;  %v2354_v50 = vpop.f32.mrb[29].mxu0 }
 0x87d   :  { %v2355_v51 = vadd.f32 %v4323_v19, %v2354_v50 }
 0x87e   :  { %4788 = vmatpush3.xpose.msk.msra.mxu1 %vm427_vm2, %v2360_v49 }
 0x87f   :  { %v4767_v54 = vpop.f32.mrb[30].mxu0  ;;  %4783 = vmatpush3.xpose.msk.msra.mxu0 %vm427_vm2, %v2355_v51  ;;  %4797 = vmatprep.subr.mxu1 %v5137_v28 }
 0x880   :  { %v2370_v61 = vadd.f32 %v4767_v54, %v4323_v19  ;;  %v2364_v62 = vpop.f32.mrb[31].mxu0  ;;  %4792 = vmatprep.subr.mxu0 %v5137_v28  ;;  %v67_v54 = vld [vmem:[%s5848_s2 + $0xe8] sm:$0xff] }
 0x881   :  { %v2365_v63 = vadd.f32 %v4323_v19, %v2364_v62  ;;  %4790 = vmatmul.mubr.msk.f32.vlgmr.msra.gmra.mrb[40].mxu1 %vm427_vm2, %v2269_v52  ;;  %v50_v62 = vld [vmem:[%s5848_s2 + $0x60] sm:$0xff] }
 0x882   :  { %4785 = vmatmul.mubr.msk.f32.vlgmr.msra.gmra.mrb[32].mxu0 %vm427_vm2, %v2264_v53  ;;  %4798 = vmatpush3.xpose.msk.msra.mxu1 %vm427_vm2, %v2370_v61  ;;  %v66_v53 = vld [vmem:[%s5848_s2 + $0xe0] sm:$0xff] }
 0x883   :  { %4793 = vmatpush3.xpose.msk.msra.mxu0 %vm427_vm2, %v2365_v63  ;;  %4799 = vmatprep.mubr.msk.f32.mxu1 %vm5138_vm1, %v5137_v28  ;;  %v5000_v61 = vpack.c.bf16 %v67_v54, %v66_v53  ;;  %v51_v63 = vld [vmem:[%s5848_s2 + $0x68] sm:$0xff] }
 0x884   :  { %4794 = vmatprep.mubr.msk.f32.mxu0 %vm5138_vm1, %v5137_v28  ;;  %4802 = vmatprep.subr.mxu0 %v5137_v28 }
 0x885   :  { %4800 = vmatmul.mubr.msk.f32.vlgmr.msra.gmra.mrb[42].mxu1 %vm427_vm2, %v2279_v57  ;;  %4807 = vmatprep.subr.mxu1 %v5137_v28  ;;  %v4992_v57 = vpack.c.bf16 %v51_v63, %v50_v62 }
 0x886   :  { %4795 = vmatmul.mubr.msk.f32.vlgmr.msra.gmra.mrb[34].mxu0 %vm427_vm2, %v2274_v0  ;;  %4808 = vmatpush3.msra.mxu1 %v2451_v55  ;;  %v52_v0 = vld [vmem:[%s5848_s2 + $0x70] sm:$0xff]  ;;  %v53_v55 = vld [vmem:[%s5848_s2 + $0x78] sm:$0xff] }
 0x887   :  { %4803 = vmatpush3.msra.mxu0 %v2446_v4  ;;  %4809 = vmatprep.mubr.msk.f32.mxu1 %vm5138_vm1, %v5137_v28  ;;  %v4996_v4 = vpack.c.bf16 %v53_v55, %v52_v0 }
 0x888   :  { %4817 = vmatprep.subr.mxu1 %v5137_v28  ;;  %4804 = vmatprep.mubr.msk.f32.mxu0 %vm5138_vm1, %v5137_v28 }
 0x889   :  { %4812 = vmatprep.subr.mxu0 %v5137_v28 }
 0x954   :  { %v2612_v6 = vpop.f32.mrb[40].mxu1 }
 0x955   :  { %v2769_v7 = vsel %vm107_vm4, -10000.0, %v2612_v6  ;;  %v2536_v8 = vpop.f32.mrb[32].mxu0  ;;  %v4791_v3 = vpop.f32.mrb[41].mxu1  ;;  %v5102_v6 = vld [vmem:[%s5846_s0 + $0x8] sm:$0xff] }
 0x956   :  { %v2768_v9 = vsel %vm106_vm3, -10000.0, %v2536_v8  ;;  %v4786_v10 = vpop.f32.mrb[33].mxu0  ;;  %v2775_v56 = vsel %vm427_vm2, %v2769_v7, -inf  ;;  %v82_v8 = vld [vmem:[%s5848_s2 + $0x160] sm:$0xff]  ;;  %v83_v3 = vld [vmem:[%s5848_s2 + $0x168] sm:$0xff] }
 0x957   :  { %2776 = vmax.xlane.f32.xlu1 %v2775_v56  ;;  %v2772_v5 = vsel %vm427_vm2, %v2768_v9, -inf  ;;  %v5008_v10 = vpack.c.bf16 %v83_v3, %v82_v8  ;;  %v85_v56 = vld [vmem:[%s5848_s2 + $0x178] sm:$0xff] }
 0x958   :  { %v2764_v2 = vpop.f32.mrb[42].mxu1  ;;  %2773 = vmax.xlane.f32.xlu0 %v2772_v5 }
 0x959   :  { %v2771_v11 = vsel %vm109_vm6, -10000.0, %v2764_v2  ;;  %v2688_v14 = vpop.f32.mrb[34].mxu0  ;;  %v4801_v20 = vpop.f32.mrb[43].mxu1  ;;  %v5104_v2 = vld [vmem:[%s5846_s0 + $0x18] sm:$0xff] }
 0x95a   :  { %v2770_v21 = vsel %vm108_vm5, -10000.0, %v2688_v14  ;;  %v4796_v22 = vpop.f32.mrb[35].mxu0  ;;  %v2781_v23 = vsel %vm427_vm2, %v2771_v11, -inf  ;;  %v5106_v14 = vld [vmem:[%s5846_s0 + $0x48] sm:$0xff]  ;;  %v5107_v20 = vld [vmem:[%s5846_s0 + $0x50] sm:$0xff] }
 0x95b   :  { %2782 = vmax.xlane.f32.xlu1 %v2781_v23  ;;  %v2778_v24 = vsel %vm427_vm2, %v2770_v21, -inf  ;;  %v68_v22 = vld [vmem:[%s5848_s2 + $0xf0] sm:$0xff]  ;;  %v69_v23 = vld [vmem:[%s5848_s2 + $0xf8] sm:$0xff] }
 0x95c   :  { %2779 = vmax.xlane.f32.xlu0 %v2778_v24 }
 0x9e4   :  { %v2777_v25 = vpop.xlane.xlu1 %2776 }
 0x9e5   :  { %v2785_v31 = vsub.f32 %v2769_v7, %v2777_v25  ;;  %v2774_v32 = vpop.xlane.xlu0 %2773  ;;  %v5103_v7 = vld [vmem:[%s5846_s0 + $0x10] sm:$0xff] }
 0x9e6   :  { %v2784_v12 = vsub.f32 %v2768_v9, %v2774_v32  ;;  %v84_v9 = vld [vmem:[%s5848_s2 + $0x170] sm:$0xff]  ;;  %v5004_v32 = vpack.c.bf16 %v69_v23, %v68_v22 }
 0x9e7   :  { %v2790_v33 = vmul.f32 1.442695, %v2785_v31  ;;  %v5012_v5 = vpack.c.bf16 %v85_v56, %v84_v9 }
 0x9e8   :  { %v2788_v13 = vmul.f32 1.442695, %v2784_v12  ;;  %v2783_v15 = vpop.xlane.xlu1 %2782 }
 0x9e9   :  { %5069 = vpow2.f32 %v2790_v33  ;;  %v2787_v26 = vsub.f32 %v2771_v11, %v2783_v15  ;;  %v2780_v27 = vpop.xlane.xlu0 %2779  ;;  %v5105_v11 = vld [vmem:[%s5846_s0 + $0x40] sm:$0xff] }
 0x9ea   :  { %5071 = vpow2.f32 %v2788_v13  ;;  %v2786_v34 = vsub.f32 %v2770_v21, %v2780_v27  ;;  %v5108_v21 = vld [vmem:[%s5846_s0 + $0x58] sm:$0xff]  ;;  %v5109_v27 = vld [vmem:[%s5846_s0 + $0x20] sm:$0xff] }
 0x9eb   :  { %v2794_v29 = vmul.f32 1.442695, %v2787_v26 }
 0x9ec   :  { %v2792_v35 = vmul.f32 1.442695, %v2786_v34  ;;  %v5110_v34 = vld [vmem:[%s5846_s0 + $0x28] sm:$0xff] }
 0x9ed   :  { %5073 = vpow2.f32 %v2794_v29  ;;  %v5111_v29 = vld [vmem:[%s5846_s0 + $0x30] sm:$0xff] }
 0x9ee   :  { %5075 = vpow2.f32 %v2792_v35  ;;  %v5112_v35 = vld [vmem:[%s5846_s0 + $0x38] sm:$0xff] }
 0x9f3   :  { %v5070_v36 = vpop.eup %5069 }
 0x9f4   :  { %v5072_v30 = vpop.eup %5071  ;;  %v2799_v37 = vsel %vm427_vm2, %v5070_v36, 0.0 }
 0x9f5   :  { %2800 = vadd.xlane.f32.xlu1 %v2799_v37  ;;  %v2796_v38 = vsel %vm427_vm2, %v5072_v30, 0.0 }
 0x9f6   :  { %2797 = vadd.xlane.f32.xlu0 %v2796_v38 }
 0x9f7   :  { %v5074_v39 = vpop.eup %5073 }
 0x9f8   :  { %v5076_v40 = vpop.eup %5075  ;;  %v2805_v41 = vsel %vm427_vm2, %v5074_v39, 0.0 }
 0x9f9   :  { %2806 = vadd.xlane.f32.xlu1 %v2805_v41  ;;  %v2802_v42 = vsel %vm427_vm2, %v5076_v40, 0.0 }
 0x9fa   :  { %2803 = vadd.xlane.f32.xlu0 %v2802_v42  ;;  %v4349_v42 = vld [vmem:[%s5849_s3 + $0x3] ss:$0 sm:$0xff] }
 0xa82   :  { %v2801_v43 = vpop.xlane.xlu1 %2800 }
 0xa83   :  { %5077 = vrcp.f32 %v2801_v43  ;;  %v2798_v16 = vpop.xlane.xlu0 %2797 }
 0xa84   :  { %5079 = vrcp.f32 %v2798_v16 }
 0xa86   :  { %v2807_v44 = vpop.xlane.xlu1 %2806 }
 0xa87   :  { %5081 = vrcp.f32 %v2807_v44  ;;  %v2804_v17 = vpop.xlane.xlu0 %2803 }
 0xa88   :  { %5083 = vrcp.f32 %v2804_v17 }
 0xa8d   :  { %v5078_v18 = vpop.eup %5077 }
 0xa8e   :  { %v5080_v19 = vpop.eup %5079  ;;  %v2813_v47 = vmul.f32 %v5078_v18, %v5070_v36 }
 0xa8f   :  { %v2812_v48 = vmul.f32 %v5080_v19, %v5072_v30 }
 0xa90   :  { %4810 = vmatmul.mubr.msk.f32.vlgmr.msra.gmra.mrb[44].mxu1 %vm427_vm2, %v2813_v47 }
 0xa91   :  { %v5082_v49 = vpop.eup %5081  ;;  %4818 = vmatpush3.msra.mxu1 %v5601_v45  ;;  %4805 = vmatmul.mubr.msk.f32.vlgmr.msra.gmra.mrb[36].mxu0 %vm427_vm2, %v2812_v48  ;;  %v5101_v45 = vld [vmem:[%s5846_s0] sm:$0xff] }
 0xa92   :  { %v5084_v50 = vpop.eup %5083  ;;  %v2815_v51 = vmul.f32 %v5082_v49, %v5074_v39  ;;  %4813 = vmatpush3.msra.mxu0 %v5603_v46  ;;  %4819 = vmatprep.mubr.msk.f32.mxu1 %vm5138_vm1, %v5137_v28  ;;  %v100_v46 = vld [vmem:[%s5850_s4 + $0x10] sm:$0xff] }
 0xa93   :  { %v2814_v52 = vmul.f32 %v5084_v50, %v5076_v40  ;;  %4814 = vmatprep.mubr.msk.f32.mxu0 %vm5138_vm1, %v5137_v28  ;;  %4822 = vmatprep.subr.mxu0 %v100_v46  ;;  %v4354_v40 = vld [vmem:[%s5849_s3 + $0x7] ss:$0 sm:$0xff]  ;;  %v5773_v50 = vld [vmem:[%s5849_s3 + $0xb] ss:$0 sm:$0xff] }
 0xa94   :  { %4820 = vmatmul.mubr.msk.f32.vlgmr.msra.gmra.mrb[46].mxu1 %vm427_vm2, %v2815_v51  ;;  %4993 = vmatprep.subr.bf16.mxu1 %v4992_v57 }
 0xa95   :  { %4815 = vmatmul.mubr.msk.f32.vlgmr.msra.gmra.mrb[38].mxu0 %vm427_vm2, %v2814_v52  ;;  %4838 = vmatprep.mubr.msk.f32.mxu1 %vm123_vm0, %v5101_v45 }
 0xa96   :  { %4823 = vmatpush3.msra.mxu0 %v100_v46  ;;  %4995 = vmatpush3.bf16.msra.mxu1 %v4992_v57 }
 0xa97   :  { %5001 = vmatprep.subr.bf16.mxu0 %v5000_v61  ;;  %4997 = vmatprep.subr.bf16.mxu1 %v4996_v4 }
 0xa9a   :  { %4999 = vmatpush3.bf16.msra.mxu1 %v4996_v4 }
 0xa9b   :  { %5009 = vmatprep.subr.bf16.mxu1 %v5008_v10 }
 0xa9d   :  { %4839 = vmatmul.mubr.msk.f32.vlgmr.msra.gmra.mrb[48].mxu1 %vm123_vm0, %v5102_v6 }
 0xa9e   :  { %4841 = vmatprep.mubr.msk.f32.mxu1 %vm123_vm0, %v5103_v7  ;;  %5011 = vmatpush3.bf16.msra.mxu1 %v5008_v10 }
 0xa9f   :  { %5013 = vmatprep.subr.bf16.mxu1 %v5012_v5 }
 0xaa1   :  { %4842 = vmatmul.mubr.msk.f32.gmra.mrb[50].mxu1 %vm123_vm0, %v5104_v2 }
 0xaa2   :  { %4866 = vmatprep.mubr.msk.f32.mxu1 %vm123_vm0, %v5105_v11  ;;  %5015 = vmatpush3.bf16.msra.mxu1 %v5012_v5 }
 0xaa3   :  { %4882 = vmatprep.subr.mxu1 %v5137_v28 }
 0xaa5   :  { %4867 = vmatmul.mubr.msk.f32.vlgmr.msra.gmra.mrb[52].mxu1 %vm123_vm0, %v5106_v14 }
 0xaa6   :  { %4869 = vmatprep.mubr.msk.f32.mxu1 %vm123_vm0, %v5107_v20 }
 0xaa9   :  { %4870 = vmatmul.mubr.msk.f32.gmra.mrb[54].mxu1 %vm123_vm0, %v5108_v21 }
 0xaaa   :  { %4884 = vmatprep.mubr.msk.f32.mxu1 %vm5138_vm1, %v5137_v28 }
 0xb63   :  { %v2958_v24 = vpop.f32.mrb[44].mxu1 }
 0xb64   :  { %v2885_v25 = vpop.f32.mrb[36].mxu0  ;;  %v4811_v31 = vpop.f32.mrb[45].mxu1 }
 0xb65   :  { %v4806_v12 = vpop.f32.mrb[37].mxu0  ;;  %4824 = vmatprep.mubr.msk.f32.mxu0 %vm427_vm2, %v2885_v25 }
 0xb66   :  { %4825 = vmatmul.mubr.msk.f32.vlgmr.msra.gmra.mrb[10].mxu0 %vm427_vm2, %v2958_v24 }
 0xb67   :  { %v3104_v33 = vpop.f32.mrb[46].mxu1  ;;  %5003 = vmatpush3.bf16.msra.mxu0 %v5000_v61 }
 0xb68   :  { %v3031_v13 = vpop.f32.mrb[38].mxu0  ;;  %v4821_v15 = vpop.f32.mrb[47].mxu1  ;;  %5005 = vmatprep.subr.bf16.mxu0 %v5004_v32 }
 0xb69   :  { %v4816_v26 = vpop.f32.mrb[39].mxu0  ;;  %4827 = vmatprep.mubr.msk.f32.mxu0 %vm427_vm2, %v3031_v13 }
 0xb6a   :  { %4828 = vmatmul.mubr.msk.f32.gmra.mrb[12].mxu0 %vm427_vm2, %v3104_v33 }
 0xb6b   :  { %5007 = vmatpush3.bf16.msra.mxu0 %v5004_v32  ;;  %4852 = vmatprep.mubr.msk.f32.mxu0 %vm123_vm0, %v5109_v27 }
 0xb6c   :  { %4872 = vmatprep.subr.mxu0 %v5137_v28 }
 0xb6e   :  { %4853 = vmatmul.mubr.msk.f32.vlgmr.msra.gmra.mrb[40].mxu0 %vm123_vm0, %v5110_v34 }
 0xb6f   :  { %4855 = vmatprep.mubr.msk.f32.mxu0 %vm123_vm0, %v5111_v29 }
 0xb70   :  { %v4840_v36 = vpop.f32.mrb[48].mxu1 }
 0xb71   :  { %v3281_v30 = vpop.f32.mrb[49].mxu1  ;;  %v3287_v49 = vadd.f32 %v4840_v36, %v4349_v42 }
 0xb72   :  { %4856 = vmatmul.mubr.msk.f32.gmra.mrb[42].mxu0 %vm123_vm0, %v5112_v35  ;;  %v3282_v44 = vadd.f32 %v4349_v42, %v3281_v30 }
 0xb73   :  { %4874 = vmatprep.mubr.msk.f32.mxu0 %vm5138_vm1, %v5137_v28 }
 0xb74   :  { %v4843_v37 = vpop.f32.mrb[50].mxu1 }
 0xb75   :  { %v3291_v38 = vpop.f32.mrb[51].mxu1  ;;  %v3297_v45 = vadd.f32 %v4843_v37, %v4349_v42 }
 0xb76   :  { %v3292_v48 = vadd.f32 %v4349_v42, %v3291_v38 }
 0xb78   :  { %v4868_v39 = vpop.f32.mrb[52].mxu1 }
 0xb79   :  { %v3469_v52 = vadd.f32 %v4868_v39, %v5773_v50  ;;  %v3463_v46 = vpop.f32.mrb[53].mxu1 }
 0xb7a   :  { %v3464_v53 = vadd.f32 %v5773_v50, %v3463_v46 }
 0xb7c   :  { %v5790_v54 = vpop.f32.mrb[54].mxu1 }
 0xb7d   :  { %v3473_v61 = vpop.f32.mrb[55].mxu1 }
 0xb7e   :  { %v3474_v39 = vadd.f32 %v5773_v50, %v3473_v61 }
 0xc41   :  { %v4854_v41 = vpop.f32.mrb[40].mxu0 }
 0xc42   :  { %v3372_v43 = vpop.f32.mrb[41].mxu0  ;;  %v3378_v19 = vadd.f32 %v4854_v41, %v4354_v40 }
 0xc43   :  { %v3373_v16 = vadd.f32 %v4354_v40, %v3372_v43 }
 0xc45   :  { %v4857_v17 = vpop.f32.mrb[42].mxu0  ;;  %4873 = vmatpush3.xpose.msk.msra.mxu0 %vm427_vm2, %v3373_v16  ;;  %v3479_v16 = vadd.f32 %v5790_v54, %v5773_v50 }
 0xc46   :  { %v3382_v18 = vpop.f32.mrb[43].mxu0  ;;  %4877 = vmatprep.subr.mxu0 %v5137_v28  ;;  %v3388_v51 = vadd.f32 %v4857_v17, %v4354_v40 }
 0xc47   :  { %v3383_v47 = vadd.f32 %v4354_v40, %v3382_v18  ;;  %v101_v18 = vld [vmem:[%s5850_s4 + $0x18] sm:$0xff] }
 0xc48   :  { %4875 = vmatmul.mubr.msk.f32.vlgmr.msra.gmra.mrb[44].mxu0 %vm427_vm2, %v3282_v44 }
 0xc49   :  { %4878 = vmatpush3.xpose.msk.msra.mxu0 %vm427_vm2, %v3378_v19  ;;  %4883 = vmatpush3.xpose.msk.msra.mxu1 %vm427_vm2, %v3383_v47 }
 0xc4a   :  { %4879 = vmatprep.mubr.msk.f32.mxu0 %vm5138_vm1, %v5137_v28  ;;  %4887 = vmatprep.subr.mxu0 %v5137_v28 }
 0xc4b   :  { %4892 = vmatprep.subr.mxu1 %v5137_v28 }
 0xc4c   :  { %4880 = vmatmul.mubr.msk.f32.vlgmr.msra.gmra.mrb[46].mxu0 %vm427_vm2, %v3287_v49  ;;  %4885 = vmatmul.mubr.msk.f32.vlgmr.msra.gmra.mrb[56].mxu1 %vm427_vm2, %v3292_v48 }
 0xc4d   :  { %4888 = vmatpush3.xpose.msk.msra.mxu0 %vm427_vm2, %v3388_v51  ;;  %4889 = vmatprep.mubr.msk.f32.mxu0 %vm5138_vm1, %v5137_v28 }
 0xc4e   :  { %4897 = vmatprep.subr.mxu0 %v5137_v28  ;;  %4894 = vmatprep.mubr.msk.f32.mxu1 %vm5138_vm1, %v5137_v28 }
 0xc4f   :  { %4893 = vmatpush3.msra.mxu1 %v3464_v53 }
 0xc50   :  { %4890 = vmatmul.mubr.msk.f32.vlgmr.msra.gmra.mrb[48].mxu0 %vm427_vm2, %v3297_v45  ;;  %4902 = vmatprep.subr.mxu1 %v5137_v28  ;;  %v4255_v45 = vld [vmem:[%s5851_s5] ss:$0 sm:$0xff]  ;;  %s5113_s5 = scalar_lea.vmem %s4237_s7, 512 }
 0xc51   :  { %4898 = vmatpush3.msra.mxu0 %v3469_v52  ;;  %4899 = vmatprep.mubr.msk.f32.mxu0 %vm5138_vm1, %v5137_v28  ;;  %p5114_p0 = scmp.ne.s32.totalorder %s4237_s7, %s5113_s5  ;;  %p5119_p2 = scmp.lt.s32.totalorder %s5113_s5, %s5113_s5 }
 0xc52   :  { %4907 = vmatprep.subr.mxu0 %v5137_v28 }
 0xc53   :  { %p5120_p3 = por %p5119_p2, %p5118_p1 }
 0xc55   :  { %p5121_p4 = pnand %p5120_p3, %p5114_p0 }
 0xd1b   :  { %v3554_v62 = vpop.f32.mrb[44].mxu0 }
 0xd1c   :  { %v3786_v63 = vsel %vm106_vm3, -10000.0, %v3554_v62  ;;  %v4876_v57 = vpop.f32.mrb[45].mxu0 }
 0xd1d   :  { %v3790_v0 = vsel %vm427_vm2, %v3786_v63, -inf }
 0xd1e   :  { %3791 = vmax.xlane.f32.xlu0 %v3790_v0 }
 0xd1f   :  { %v3630_v55 = vpop.f32.mrb[46].mxu0  ;;  %v3706_v4 = vpop.f32.mrb[56].mxu1 }
 0xd20   :  { %v3787_v6 = vsel %vm107_vm4, -10000.0, %v3630_v55  ;;  %v3788_v7 = vsel %vm108_vm5, -10000.0, %v3706_v4  ;;  %v4881_v8 = vpop.f32.mrb[47].mxu0  ;;  %v4886_v3 = vpop.f32.mrb[57].mxu1 }
 0xd21   :  { %v3796_v9 = vsel %vm427_vm2, %v3788_v7, -inf  ;;  %v3793_v10 = vsel %vm427_vm2, %v3787_v6, -inf }
 0xd22   :  { %3797 = vmax.xlane.f32.xlu0 %v3796_v9  ;;  %3794 = vmax.xlane.f32.xlu1 %v3793_v10 }
 0xd23   :  { %v3782_v58 = vpop.f32.mrb[48].mxu0 }
 0xd24   :  { %v3789_v56 = vsel %vm109_vm6, -10000.0, %v3782_v58  ;;  %v4891_v5 = vpop.f32.mrb[49].mxu0 }
 0xd25   :  { %v3799_v2 = vsel %vm427_vm2, %v3789_v56, -inf }
 0xd26   :  { %3800 = vmax.xlane.f32.xlu1 %v3799_v2 }
 0xdab   :  { %v3792_v59 = vpop.xlane.xlu0 %3791 }
 0xdac   :  { %v3802_v11 = vsub.f32 %v3786_v63, %v3792_v59 }
 0xdae   :  { %v3806_v60 = vmul.f32 1.442695, %v3802_v11 }
 0xdaf   :  { %v3798_v14 = vpop.xlane.xlu0 %3797  ;;  %v3795_v20 = vpop.xlane.xlu1 %3794 }
 0xdb0   :  { %5085 = vpow2.f32 %v3806_v60  ;;  %v3804_v21 = vsub.f32 %v3788_v7, %v3798_v14  ;;  %v3803_v22 = vsub.f32 %v3787_v6, %v3795_v20 }
 0xdb2   :  { %v3810_v23 = vmul.f32 1.442695, %v3804_v21  ;;  %v3808_v24 = vmul.f32 1.442695, %v3803_v22 }
 0xdb3   :  { %v3801_v25 = vpop.xlane.xlu1 %3800 }
 0xdb4   :  { %5087 = vpow2.f32 %v3810_v23  ;;  %v3805_v31 = vsub.f32 %v3789_v56, %v3801_v25 }
 0xdb5   :  { %5089 = vpow2.f32 %v3808_v24 }
 0xdb6   :  { %v3812_v1 = vmul.f32 1.442695, %v3805_v31 }
 0xdb8   :  { %5091 = vpow2.f32 %v3812_v1 }
 0xdba   :  { %v5086_v32 = vpop.eup %5085 }
 0xdbb   :  { %v3814_v12 = vsel %vm427_vm2, %v5086_v32, 0.0 }
 0xdbc   :  { %3815 = vadd.xlane.f32.xlu0 %v3814_v12 }
 0xdbe   :  { %v5088_v33 = vpop.eup %5087 }
 0xdbf   :  { %v5090_v13 = vpop.eup %5089  ;;  %v3820_v15 = vsel %vm427_vm2, %v5088_v33, 0.0 }
 0xdc0   :  { %3821 = vadd.xlane.f32.xlu0 %v3820_v15  ;;  %v3817_v26 = vsel %vm427_vm2, %v5090_v13, 0.0 }
 0xdc1   :  { %3818 = vadd.xlane.f32.xlu1 %v3817_v26 }
 0xdc2   :  { %v5092_v27 = vpop.eup %5091 }
 0xdc3   :  { %v3823_v34 = vsel %vm427_vm2, %v5092_v27, 0.0 }
 0xdc5   :  { %3824 = vadd.xlane.f32.xlu1 %v3823_v34 }
 0xe49   :  { %v3816_v29 = vpop.xlane.xlu0 %3815 }
 0xe4a   :  { %5093 = vrcp.f32 %v3816_v29 }
 0xe4d   :  { %v3822_v35 = vpop.xlane.xlu0 %3821 }
 0xe4e   :  { %5095 = vrcp.f32 %v3822_v35  ;;  %v3819_v36 = vpop.xlane.xlu1 %3818 }
 0xe4f   :  { %5097 = vrcp.f32 %v3819_v36 }
 0xe52   :  { %v3825_v30 = vpop.xlane.xlu1 %3824 }
 0xe53   :  { %5099 = vrcp.f32 %v3825_v30 }
 0xe54   :  { %v5094_v37 = vpop.eup %5093 }
 0xe55   :  { %v3830_v38 = vmul.f32 %v5094_v37, %v5086_v32 }
 0xe57   :  { %4895 = vmatmul.mubr.msk.f32.vlgmr.msra.gmra.mrb[58].mxu1 %vm427_vm2, %v3830_v38 }
 0xe58   :  { %v5096_v40 = vpop.eup %5095  ;;  %4903 = vmatpush3.msra.mxu1 %v3474_v39  ;;  %4904 = vmatprep.mubr.msk.f32.mxu1 %vm5138_vm1, %v5137_v28 }
 0xe59   :  { %v5098_v41 = vpop.eup %5097  ;;  %v3832_v42 = vmul.f32 %v5096_v40, %v5088_v33 }
 0xe5a   :  { %v3831_v43 = vmul.f32 %v5098_v41, %v5090_v13 }
 0xe5b   :  { %4905 = vmatmul.mubr.msk.f32.vlgmr.msra.gmra.mrb[60].mxu1 %vm427_vm2, %v3832_v42 }
 0xe5c   :  { %4900 = vmatmul.mubr.msk.f32.vlgmr.msra.gmra.mrb[50].mxu0 %vm427_vm2, %v3831_v43 }
 0xe5d   :  { %v5100_v44 = vpop.eup %5099  ;;  %4908 = vmatpush3.msra.mxu0 %v3479_v16  ;;  %4909 = vmatprep.mubr.msk.f32.mxu0 %vm5138_vm1, %v5137_v28 }
 0xe5e   :  { %v3833_v17 = vmul.f32 %v5100_v44, %v5092_v27  ;;  %4912 = vmatprep.subr.mxu0 %v101_v18 }
 0xe60   :  { %4910 = vmatmul.mubr.msk.f32.vlgmr.msra.gmra.mrb[52].mxu0 %vm427_vm2, %v3833_v17 }
 0xe61   :  { %4913 = vmatpush3.msra.mxu0 %v101_v18 }
 0xf2a   :  { %v3903_v19 = vpop.f32.mrb[58].mxu1 }
 0xf2b   :  { %v4896_v47 = vpop.f32.mrb[59].mxu1  ;;  %4914 = vmatprep.mubr.msk.f32.mxu0 %vm427_vm2, %v3903_v19 }
 0xf2e   :  { %v4049_v48 = vpop.f32.mrb[60].mxu1 }
 0xf2f   :  { %v3976_v49 = vpop.f32.mrb[50].mxu0  ;;  %v4906_v50 = vpop.f32.mrb[61].mxu1 }
 0xf30   :  { %v4901_v51 = vpop.f32.mrb[51].mxu0  ;;  %4915 = vmatmul.mubr.msk.f32.vlgmr.msra.gmra.mrb[10].mxu0 %vm427_vm2, %v3976_v49 }
 0xf31   :  { %4917 = vmatprep.mubr.msk.f32.mxu0 %vm427_vm2, %v4049_v48 }
 0xf33   :  { %v4122_v28 = vpop.f32.mrb[52].mxu0 }
 0xf34   :  { %v4911_v52 = vpop.f32.mrb[53].mxu0  ;;  %4918 = vmatmul.mubr.msk.f32.gmra.mrb[12].mxu0 %vm427_vm2, %v4122_v28 }
0x1003   :  { %v4916_v46 = vpop.f32.mrb[10].mxu0 }
0x1004   :  { %v5016_v53 = vadd.f32 %v4916_v46, %v4255_v45  ;;  %v4204_v54 = vpop.f32.mrb[11].mxu0 }
0x1005   :  { %v5017_v61 = vadd.f32 %v4255_v45, %v4204_v54 }
0x1006   :  { %4228 = vst.msk [vmem:[#allocation2 + $0x8] sm:$0xff] %vm123_vm0, %v5016_v53 }
0x1007   :  { %4227 = vst.msk [vmem:[#allocation2] sm:$0xff] %vm123_vm0, %v5017_v61  ;;  %v4919_v62 = vpop.f32.mrb[12].mxu0 }
0x1008   :  { %v5018_v63 = vadd.f32 %v4919_v62, %v4255_v45  ;;  %v4214_v57 = vpop.f32.mrb[13].mxu0 }
0x1009   :  { %v5019_v0 = vadd.f32 %v4255_v45, %v4214_v57 }
0x100a   :  { %4230 = vst.msk [vmem:[#allocation2 + $0x18] sm:$0xff] %vm123_vm0, %v5018_v63 }
0x100b   :  { %4229 = vst.msk [vmem:[#allocation2 + $0x10] sm:$0xff] %vm123_vm0, %v5019_v0 }
0x100c   :  { %5124 = shalt.err (!%p5121_p4)
}
0x100d   :  { %s5125_s10 = scalar_lea.hbm %s5852_s6, 512 }
0x100e   :  { %p5126_p5 = scmp.ne.s32.totalorder %s5852_s6, %s5125_s10  ;;  %p5129_p6 = scmp.lt.u32.totalorder %s5125_s10, %s5852_s6 }
0x1010   :  { %p5131_p7 = pnand %p5129_p6, %p5126_p5 }
0x1012   :  { %5134 = shalt.err (!%p5131_p7)
}
0x1013   :  { %s5140_s14 = smov 128   ;;  %s5141_s15 = smov 8  }
0x1014   :  { %4242 = dma.vmem_to_hbm [thread:$0]  %s4237_s7, 512, %s5852_s6, [#allocation3], %s5140_s14, %s5140_s14, %s5141_s15  }
0x1015   :  { %5135 = dma.done.wait [#allocation3], 512  }
0x1016   :  { %5136 = vsyncadd [#allocation3], 4294966784 }
0x1017   :  { %4246 = vsyncpa [#allocation3], 1 }

</bundles_post_ra>
